<compile_context>
chip_gen: v6e
topology: v6e:2x2x1
jax: 0.10.0
libtpu: 0.0.40
codegen_flags: <defaults>
</compile_context>

<pallas_src>
import jax
import jax.numpy as jnp
from jax import lax
from jax.experimental import pallas as pl
from jax.experimental.pallas import tpu as pltpu


# ----------------------------------------------------------------------------
# Fused kernel: 3 x (tanh RNN layer) + Linear head
# ----------------------------------------------------------------------------
def _make_fused_rnn_fc_kernel(num_layers, seq_len, batch):
    """Builds the fused kernel body.

    Ref order (all in VMEM):
      x_ref                : (T*B, D_in)   flattened time-major input
      per layer l:
        wih_ref            : (D_in_l, H)   W_ih^T
        whh_ref            : (H, H)        W_hh^T
        b_ref              : (1, H)        b_ih + b_hh
      fcw_ref              : (T, H, C)     W_fc^T reshaped; block t hits h_t
      fcb_ref              : (1, C)
      out_ref              : (B, C)
      buf_ref (scratch)    : (T*B, H)      holds the hoisted projection of the
                                           current layer; its rows are
                                           overwritten in place with that
                                           layer's hidden states.
    """
    T, B = seq_len, batch

    def kernel(*refs):
        x_ref = refs[0]
        layer_refs = refs[1:1 + 3 * num_layers]
        fcw_ref = refs[1 + 3 * num_layers]
        fcb_ref = refs[2 + 3 * num_layers]
        out_ref = refs[3 + 3 * num_layers]
        buf_ref = refs[4 + 3 * num_layers]

        H = buf_ref.shape[1]
        C = out_ref.shape[1]

        prev_seq = x_ref[...]                      # (T*B, D_in) for layer 0
        for layer in range(num_layers):
            wih = layer_refs[3 * layer][...]       # (D_in, H)
            whh = layer_refs[3 * layer + 1][...]   # (H, H)
            bias = layer_refs[3 * layer + 2][...]  # (1, H)

            # Hoisted input projection: ONE big matmul per layer (+ bias once),
            # instead of T tiny matmuls and T bias broadcasts in the loop.
            buf_ref[...] = (
                jnp.dot(prev_seq, wih, preferred_element_type=jnp.float32)
                + bias
            )

            is_last = layer == num_layers - 1

            if not is_last:
                def body(t, h):
                    row = pl.multiple_of(t * B, B)           # sublane-aligned
                    pre = buf_ref[pl.ds(row, B), :] + jnp.dot(
                        h, whh, preferred_element_type=jnp.float32)
                    h_new = jnp.tanh(pre)
                    # The projection slab for step t has been consumed; reuse
                    # its rows to store this layer's hidden state, which is the
                    # next layer's input sequence.
                    buf_ref[pl.ds(row, B), :] = h_new
                    return h_new

                h0 = jnp.zeros((B, H), jnp.float32)
                lax.fori_loop(0, T, body, h0, unroll=True)
                prev_seq = buf_ref[...]                      # (T*B, H)
            else:
                # Last layer: also accumulate the FC head per timestep so the
                # (B, T*H) flattened activation never needs to be materialized.
                def body(t, carry):
                    h, acc = carry
                    row = pl.multiple_of(t * B, B)
                    pre = buf_ref[pl.ds(row, B), :] + jnp.dot(
                        h, whh, preferred_element_type=jnp.float32)
                    h_new = jnp.tanh(pre)
                    acc = acc + jnp.dot(h_new, fcw_ref[t],
                                        preferred_element_type=jnp.float32)
                    return h_new, acc

                h0 = jnp.zeros((B, H), jnp.float32)
                acc0 = jnp.zeros((B, C), jnp.float32)
                _, acc = lax.fori_loop(0, T, body, (h0, acc0), unroll=True)
                out_ref[...] = acc + fcb_ref[...]

    return kernel


# ----------------------------------------------------------------------------
# Host-side wrapper
# ----------------------------------------------------------------------------
@jax.jit
def rnn_forward(x, params):
    """Full forward pass matching RNN.forward.

    x: (B, T, input_size)  (PyTorch batch_first layout)
    """
    B, T, D = x.shape
    H = params["rnn"][0]["whh_t"].shape[0]
    C = params["fc_b"].shape[1]
    num_layers = len(params["rnn"])

    # Pad batch to a multiple of 8 so per-timestep row slabs are sublane
    # aligned inside the kernel. Padded rows compute on zeros and are dropped.
    B_pad = ((B + 7) // 8) * 8
    if B_pad != B:
        x = jnp.pad(x, ((0, B_pad - B), (0, 0), (0, 0)))

    # Single host-side layout change: batch-first -> flattened time-major.
    x_tm = jnp.transpose(x, (1, 0, 2)).reshape(T * B_pad, D)

    flat_inputs = [x_tm]
    for layer in params["rnn"]:
        flat_inputs += [layer["wih_t"], layer["whh_t"], layer["bias"]]
    flat_inputs += [params["fc_w_t"].reshape(T, H, C), params["fc_b"]]

    kernel = _make_fused_rnn_fc_kernel(num_layers, T, B_pad)
    vmem = pltpu.MemorySpace.VMEM

    out = pl.pallas_call(
        kernel,
        out_shape=jax.ShapeDtypeStruct((B_pad, C), jnp.float32),
        in_specs=[pl.BlockSpec(memory_space=vmem) for _ in flat_inputs],
        out_specs=pl.BlockSpec(memory_space=vmem),
        scratch_shapes=[pltpu.VMEM((T * B_pad, H), jnp.float32)],
        compiler_params=pltpu.CompilerParams(
            vmem_limit_bytes=64 * 1024 * 1024),
    )(*flat_inputs)
    return out[:B]


# ----------------------------------------------------------------------------
# Deterministic parameter init (mirrors nn.RNN / nn.Linear uniform init)
# ----------------------------------------------------------------------------
def init_params(key, input_size, hidden_size, num_layers, num_classes, seq_len):
    params = {"rnn": []}
    bound_rnn = 1.0 / jnp.sqrt(hidden_size)
    keys = jax.random.split(key, num_layers * 4 + 2)
    k = 0
    for layer in range(num_layers):
        d_in = input_size if layer == 0 else hidden_size
        wih = jax.random.uniform(keys[k], (hidden_size, d_in),
                                 minval=-bound_rnn, maxval=bound_rnn); k += 1
        whh = jax.random.uniform(keys[k], (hidden_size, hidden_size),
                                 minval=-bound_rnn, maxval=bound_rnn); k += 1
        bih = jax.random.uniform(keys[k], (hidden_size,),
                                 minval=-bound_rnn, maxval=bound_rnn); k += 1
        bhh = jax.random.uniform(keys[k], (hidden_size,),
                                 minval=-bound_rnn, maxval=bound_rnn); k += 1
        params["rnn"].append({
            "wih_t": wih.T.astype(jnp.float32),                  # (D_in, H)
            "whh_t": whh.T.astype(jnp.float32),                  # (H, H)
            "bias": (bih + bhh).reshape(1, hidden_size).astype(jnp.float32),
        })
    fc_in = hidden_size * seq_len
    bound_fc = 1.0 / jnp.sqrt(fc_in)
    w_fc = jax.random.uniform(keys[k], (num_classes, fc_in),
                              minval=-bound_fc, maxval=bound_fc); k += 1
    b_fc = jax.random.uniform(keys[k], (num_classes,),
                              minval=-bound_fc, maxval=bound_fc)
    params["fc_w_t"] = w_fc.T.astype(jnp.float32)                # (T*H, C)
    params["fc_b"] = b_fc.reshape(1, num_classes).astype(jnp.float32)
    return params


# ----------------------------------------------------------------------------
# Pure-JAX reference (correctness check)
# ----------------------------------------------------------------------------
def rnn_forward_ref(x, params):
    B, T, _ = x.shape
    h_seq = jnp.transpose(x, (1, 0, 2))
    for layer in params["rnn"]:
        def step(h, x_t, layer=layer):
            h_new = jnp.tanh(x_t @ layer["wih_t"] + h @ layer["whh_t"]
                             + layer["bias"])
            return h_new, h_new
        h0 = jnp.zeros((B, layer["whh_t"].shape[0]), jnp.float32)
        _, h_seq = lax.scan(step, h0, h_seq)
    out = jnp.transpose(h_seq, (1, 0, 2)).reshape(B, -1)
    return out @ params["fc_w_t"] + params["fc_b"]


if __name__ == "__main__":
    # Small shapes consistent with the module's forward contract.
    batch = 8
    seq_len = 8          # sequence_length (scaled down from 750)
    input_size = 64
    hidden_size = 64
    num_layers = 3
    num_classes = 2

    key = jax.random.PRNGKey(0)
    key_p, key_x = jax.random.split(key)
    params = init_params(key_p, input_size, hidden_size, num_layers,
                         num_classes, seq_len)
    x = jax.random.normal(key_x, (batch, seq_len, input_size), jnp.float32)

    out = jax.block_until_ready(rnn_forward(x, params))
    ref = jax.block_until_ready(rnn_forward_ref(x, params))

    assert out.shape == (batch, num_classes)
    assert jnp.allclose(out, ref, atol=1e-4, rtol=1e-4), (
        float(jnp.max(jnp.abs(out - ref))))

    print("KERNEL_OK")
</pallas_src>

<mosaic_0001>
module attributes {stable_mosaic.version = 11 : i64} {
  func.func @kernel(%arg0: memref<64x64xf32, #tpu.memory_space<vmem>>, %arg1: memref<64x64xf32, #tpu.memory_space<vmem>>, %arg2: memref<64x64xf32, #tpu.memory_space<vmem>>, %arg3: memref<1x64xf32, #tpu.memory_space<vmem>>, %arg4: memref<64x64xf32, #tpu.memory_space<vmem>>, %arg5: memref<64x64xf32, #tpu.memory_space<vmem>>, %arg6: memref<1x64xf32, #tpu.memory_space<vmem>>, %arg7: memref<64x64xf32, #tpu.memory_space<vmem>>, %arg8: memref<64x64xf32, #tpu.memory_space<vmem>>, %arg9: memref<1x64xf32, #tpu.memory_space<vmem>>, %arg10: memref<8x64x2xf32, #tpu.memory_space<vmem>>, %arg11: memref<1x2xf32, #tpu.memory_space<vmem>>, %arg12: memref<8x2xf32, #tpu.memory_space<vmem>>, %arg13: memref<64x64xf32, #tpu.memory_space<vmem>>) attributes {dimension_semantics = [], scalar_prefetch = 0 : i64, scratch_operands = 1 : i64, tpu.core_type = #tpu.core_type<tc>} {
    %c0 = arith.constant 0 : index
    %c0_0 = arith.constant 0 : index
    %0 = vector.load %arg0[%c0, %c0_0] : memref<64x64xf32, #tpu.memory_space<vmem>>, vector<64x64xf32>
    %c0_1 = arith.constant 0 : index
    %c0_2 = arith.constant 0 : index
    %1 = vector.load %arg1[%c0_1, %c0_2] : memref<64x64xf32, #tpu.memory_space<vmem>>, vector<64x64xf32>
    %c0_3 = arith.constant 0 : index
    %c0_4 = arith.constant 0 : index
    %2 = vector.load %arg2[%c0_3, %c0_4] : memref<64x64xf32, #tpu.memory_space<vmem>>, vector<64x64xf32>
    %c0_5 = arith.constant 0 : index
    %c0_6 = arith.constant 0 : index
    %3 = vector.load %arg3[%c0_5, %c0_6] : memref<1x64xf32, #tpu.memory_space<vmem>>, vector<1x64xf32>
    %cst = arith.constant dense<0.000000e+00> : vector<64x64xf32>
    %4 = tpu.matmul %0, %1, %cst {dimension_numbers = #tpu.dot_dimension_numbers<[1], [0], [0], [1], [0, 0, 1, 1], [], []>} : vector<64x64xf32>, vector<64x64xf32>, vector<64x64xf32> -> vector<64x64xf32>
    %5 = vector.broadcast %3 : vector<1x64xf32> to vector<64x64xf32>
    %6 = arith.addf %4, %5 : vector<64x64xf32>
    %c0_7 = arith.constant 0 : index
    %c0_8 = arith.constant 0 : index
    %7 = vector.load %arg13[%c0_7, %c0_8] : memref<64x64xf32, #tpu.memory_space<vmem>>, vector<64x64xf32>
    tpu.vector_store %arg13[%c0_7, %c0_8], %6 {strides = array<i32>} : memref<64x64xf32, #tpu.memory_space<vmem>>, vector<64x64xf32>,
    %cst_9 = arith.constant 0.000000e+00 : f32
    %8 = vector.broadcast %cst_9 : f32 to vector<8x64xf32>
    %c0_i32 = arith.constant 0 : i32
    %c8_i32 = arith.constant 8 : i32
    %9 = arith.muli %c0_i32, %c8_i32 : i32
    %10 = tpu.assume_multiple %9, 8 : i32
    %11 = arith.index_cast %10 : i32 to index
    %c0_10 = arith.constant 0 : index
    %12 = vector.load %arg13[%11, %c0_10] : memref<64x64xf32, #tpu.memory_space<vmem>>, vector<8x64xf32>
    %cst_11 = arith.constant dense<0.000000e+00> : vector<8x64xf32>
    %13 = tpu.matmul %8, %2, %cst_11 {dimension_numbers = #tpu.dot_dimension_numbers<[1], [0], [0], [1], [0, 0, 1, 1], [], []>} : vector<8x64xf32>, vector<64x64xf32>, vector<8x64xf32> -> vector<8x64xf32>
    %14 = arith.addf %12, %13 : vector<8x64xf32>
    %15 = math.tanh %14 : vector<8x64xf32>
    %16 = arith.index_cast %10 : i32 to index
    %c0_12 = arith.constant 0 : index
    %17 = vector.load %arg13[%16, %c0_12] : memref<64x64xf32, #tpu.memory_space<vmem>>, vector<8x64xf32>
    tpu.vector_store %arg13[%16, %c0_12], %15 {strides = array<i32>} : memref<64x64xf32, #tpu.memory_space<vmem>>, vector<8x64xf32>,
    %c1_i32 = arith.constant 1 : i32
    %c8_i32_13 = arith.constant 8 : i32
    %18 = arith.muli %c1_i32, %c8_i32_13 : i32
    %19 = tpu.assume_multiple %18, 8 : i32
    %20 = arith.index_cast %19 : i32 to index
    %c0_14 = arith.constant 0 : index
    %21 = vector.load %arg13[%20, %c0_14] : memref<64x64xf32, #tpu.memory_space<vmem>>, vector<8x64xf32>
    %cst_15 = arith.constant dense<0.000000e+00> : vector<8x64xf32>
    %22 = tpu.matmul %15, %2, %cst_15 {dimension_numbers = #tpu.dot_dimension_numbers<[1], [0], [0], [1], [0, 0, 1, 1], [], []>} : vector<8x64xf32>, vector<64x64xf32>, vector<8x64xf32> -> vector<8x64xf32>
    %23 = arith.addf %21, %22 : vector<8x64xf32>
    %24 = math.tanh %23 : vector<8x64xf32>
    %25 = arith.index_cast %19 : i32 to index
    %c0_16 = arith.constant 0 : index
    %26 = vector.load %arg13[%25, %c0_16] : memref<64x64xf32, #tpu.memory_space<vmem>>, vector<8x64xf32>
    tpu.vector_store %arg13[%25, %c0_16], %24 {strides = array<i32>} : memref<64x64xf32, #tpu.memory_space<vmem>>, vector<8x64xf32>,
    %c2_i32 = arith.constant 2 : i32
    %c8_i32_17 = arith.constant 8 : i32
    %27 = arith.muli %c2_i32, %c8_i32_17 : i32
    %28 = tpu.assume_multiple %27, 8 : i32
    %29 = arith.index_cast %28 : i32 to index
    %c0_18 = arith.constant 0 : index
    %30 = vector.load %arg13[%29, %c0_18] : memref<64x64xf32, #tpu.memory_space<vmem>>, vector<8x64xf32>
    %cst_19 = arith.constant dense<0.000000e+00> : vector<8x64xf32>
    %31 = tpu.matmul %24, %2, %cst_19 {dimension_numbers = #tpu.dot_dimension_numbers<[1], [0], [0], [1], [0, 0, 1, 1], [], []>} : vector<8x64xf32>, vector<64x64xf32>, vector<8x64xf32> -> vector<8x64xf32>
    %32 = arith.addf %30, %31 : vector<8x64xf32>
    %33 = math.tanh %32 : vector<8x64xf32>
    %34 = arith.index_cast %28 : i32 to index
    %c0_20 = arith.constant 0 : index
    %35 = vector.load %arg13[%34, %c0_20] : memref<64x64xf32, #tpu.memory_space<vmem>>, vector<8x64xf32>
    tpu.vector_store %arg13[%34, %c0_20], %33 {strides = array<i32>} : memref<64x64xf32, #tpu.memory_space<vmem>>, vector<8x64xf32>,
    %c3_i32 = arith.constant 3 : i32
    %c8_i32_21 = arith.constant 8 : i32
    %36 = arith.muli %c3_i32, %c8_i32_21 : i32
    %37 = tpu.assume_multiple %36, 8 : i32
    %38 = arith.index_cast %37 : i32 to index
    %c0_22 = arith.constant 0 : index
    %39 = vector.load %arg13[%38, %c0_22] : memref<64x64xf32, #tpu.memory_space<vmem>>, vector<8x64xf32>
    %cst_23 = arith.constant dense<0.000000e+00> : vector<8x64xf32>
    %40 = tpu.matmul %33, %2, %cst_23 {dimension_numbers = #tpu.dot_dimension_numbers<[1], [0], [0], [1], [0, 0, 1, 1], [], []>} : vector<8x64xf32>, vector<64x64xf32>, vector<8x64xf32> -> vector<8x64xf32>
    %41 = arith.addf %39, %40 : vector<8x64xf32>
    %42 = math.tanh %41 : vector<8x64xf32>
    %43 = arith.index_cast %37 : i32 to index
    %c0_24 = arith.constant 0 : index
    %44 = vector.load %arg13[%43, %c0_24] : memref<64x64xf32, #tpu.memory_space<vmem>>, vector<8x64xf32>
    tpu.vector_store %arg13[%43, %c0_24], %42 {strides = array<i32>} : memref<64x64xf32, #tpu.memory_space<vmem>>, vector<8x64xf32>,
    %c4_i32 = arith.constant 4 : i32
    %c8_i32_25 = arith.constant 8 : i32
    %45 = arith.muli %c4_i32, %c8_i32_25 : i32
    %46 = tpu.assume_multiple %45, 8 : i32
    %47 = arith.index_cast %46 : i32 to index
    %c0_26 = arith.constant 0 : index
    %48 = vector.load %arg13[%47, %c0_26] : memref<64x64xf32, #tpu.memory_space<vmem>>, vector<8x64xf32>
    %cst_27 = arith.constant dense<0.000000e+00> : vector<8x64xf32>
    %49 = tpu.matmul %42, %2, %cst_27 {dimension_numbers = #tpu.dot_dimension_numbers<[1], [0], [0], [1], [0, 0, 1, 1], [], []>} : vector<8x64xf32>, vector<64x64xf32>, vector<8x64xf32> -> vector<8x64xf32>
    %50 = arith.addf %48, %49 : vector<8x64xf32>
    %51 = math.tanh %50 : vector<8x64xf32>
    %52 = arith.index_cast %46 : i32 to index
    %c0_28 = arith.constant 0 : index
    %53 = vector.load %arg13[%52, %c0_28] : memref<64x64xf32, #tpu.memory_space<vmem>>, vector<8x64xf32>
    tpu.vector_store %arg13[%52, %c0_28], %51 {strides = array<i32>} : memref<64x64xf32, #tpu.memory_space<vmem>>, vector<8x64xf32>,
    %c5_i32 = arith.constant 5 : i32
    %c8_i32_29 = arith.constant 8 : i32
    %54 = arith.muli %c5_i32, %c8_i32_29 : i32
    %55 = tpu.assume_multiple %54, 8 : i32
    %56 = arith.index_cast %55 : i32 to index
    %c0_30 = arith.constant 0 : index
    %57 = vector.load %arg13[%56, %c0_30] : memref<64x64xf32, #tpu.memory_space<vmem>>, vector<8x64xf32>
    %cst_31 = arith.constant dense<0.000000e+00> : vector<8x64xf32>
    %58 = tpu.matmul %51, %2, %cst_31 {dimension_numbers = #tpu.dot_dimension_numbers<[1], [0], [0], [1], [0, 0, 1, 1], [], []>} : vector<8x64xf32>, vector<64x64xf32>, vector<8x64xf32> -> vector<8x64xf32>
    %59 = arith.addf %57, %58 : vector<8x64xf32>
    %60 = math.tanh %59 : vector<8x64xf32>
    %61 = arith.index_cast %55 : i32 to index
    %c0_32 = arith.constant 0 : index
    %62 = vector.load %arg13[%61, %c0_32] : memref<64x64xf32, #tpu.memory_space<vmem>>, vector<8x64xf32>
    tpu.vector_store %arg13[%61, %c0_32], %60 {strides = array<i32>} : memref<64x64xf32, #tpu.memory_space<vmem>>, vector<8x64xf32>,
    %c6_i32 = arith.constant 6 : i32
    %c8_i32_33 = arith.constant 8 : i32
    %63 = arith.muli %c6_i32, %c8_i32_33 : i32
    %64 = tpu.assume_multiple %63, 8 : i32
    %65 = arith.index_cast %64 : i32 to index
    %c0_34 = arith.constant 0 : index
    %66 = vector.load %arg13[%65, %c0_34] : memref<64x64xf32, #tpu.memory_space<vmem>>, vector<8x64xf32>
    %cst_35 = arith.constant dense<0.000000e+00> : vector<8x64xf32>
    %67 = tpu.matmul %60, %2, %cst_35 {dimension_numbers = #tpu.dot_dimension_numbers<[1], [0], [0], [1], [0, 0, 1, 1], [], []>} : vector<8x64xf32>, vector<64x64xf32>, vector<8x64xf32> -> vector<8x64xf32>
    %68 = arith.addf %66, %67 : vector<8x64xf32>
    %69 = math.tanh %68 : vector<8x64xf32>
    %70 = arith.index_cast %64 : i32 to index
    %c0_36 = arith.constant 0 : index
    %71 = vector.load %arg13[%70, %c0_36] : memref<64x64xf32, #tpu.memory_space<vmem>>, vector<8x64xf32>
    tpu.vector_store %arg13[%70, %c0_36], %69 {strides = array<i32>} : memref<64x64xf32, #tpu.memory_space<vmem>>, vector<8x64xf32>,
    %c7_i32 = arith.constant 7 : i32
    %c8_i32_37 = arith.constant 8 : i32
    %72 = arith.muli %c7_i32, %c8_i32_37 : i32
    %73 = tpu.assume_multiple %72, 8 : i32
    %74 = arith.index_cast %73 : i32 to index
    %c0_38 = arith.constant 0 : index
    %75 = vector.load %arg13[%74, %c0_38] : memref<64x64xf32, #tpu.memory_space<vmem>>, vector<8x64xf32>
    %cst_39 = arith.constant dense<0.000000e+00> : vector<8x64xf32>
    %76 = tpu.matmul %69, %2, %cst_39 {dimension_numbers = #tpu.dot_dimension_numbers<[1], [0], [0], [1], [0, 0, 1, 1], [], []>} : vector<8x64xf32>, vector<64x64xf32>, vector<8x64xf32> -> vector<8x64xf32>
    %77 = arith.addf %75, %76 : vector<8x64xf32>
    %78 = math.tanh %77 : vector<8x64xf32>
    %79 = arith.index_cast %73 : i32 to index
    %c0_40 = arith.constant 0 : index
    %80 = vector.load %arg13[%79, %c0_40] : memref<64x64xf32, #tpu.memory_space<vmem>>, vector<8x64xf32>
    tpu.vector_store %arg13[%79, %c0_40], %78 {strides = array<i32>} : memref<64x64xf32, #tpu.memory_space<vmem>>, vector<8x64xf32>,
    %c8_i32_41 = arith.constant 8 : i32
    %c0_42 = arith.constant 0 : index
    %c0_43 = arith.constant 0 : index
    %81 = vector.load %arg13[%c0_42, %c0_43] : memref<64x64xf32, #tpu.memory_space<vmem>>, vector<64x64xf32>
    %c0_44 = arith.constant 0 : index
    %c0_45 = arith.constant 0 : index
    %82 = vector.load %arg4[%c0_44, %c0_45] : memref<64x64xf32, #tpu.memory_space<vmem>>, vector<64x64xf32>
    %c0_46 = arith.constant 0 : index
    %c0_47 = arith.constant 0 : index
    %83 = vector.load %arg5[%c0_46, %c0_47] : memref<64x64xf32, #tpu.memory_space<vmem>>, vector<64x64xf32>
    %c0_48 = arith.constant 0 : index
    %c0_49 = arith.constant 0 : index
    %84 = vector.load %arg6[%c0_48, %c0_49] : memref<1x64xf32, #tpu.memory_space<vmem>>, vector<1x64xf32>
    %cst_50 = arith.constant dense<0.000000e+00> : vector<64x64xf32>
    %85 = tpu.matmul %81, %82, %cst_50 {dimension_numbers = #tpu.dot_dimension_numbers<[1], [0], [0], [1], [0, 0, 1, 1], [], []>} : vector<64x64xf32>, vector<64x64xf32>, vector<64x64xf32> -> vector<64x64xf32>
    %86 = vector.broadcast %84 : vector<1x64xf32> to vector<64x64xf32>
    %87 = arith.addf %85, %86 : vector<64x64xf32>
    %c0_51 = arith.constant 0 : index
    %c0_52 = arith.constant 0 : index
    %88 = vector.load %arg13[%c0_51, %c0_52] : memref<64x64xf32, #tpu.memory_space<vmem>>, vector<64x64xf32>
    tpu.vector_store %arg13[%c0_51, %c0_52], %87 {strides = array<i32>} : memref<64x64xf32, #tpu.memory_space<vmem>>, vector<64x64xf32>,
    %cst_53 = arith.constant 0.000000e+00 : f32
    %89 = vector.broadcast %cst_53 : f32 to vector<8x64xf32>
    %c0_i32_54 = arith.constant 0 : i32
    %c8_i32_55 = arith.constant 8 : i32
    %90 = arith.muli %c0_i32_54, %c8_i32_55 : i32
    %91 = tpu.assume_multiple %90, 8 : i32
    %92 = arith.index_cast %91 : i32 to index
    %c0_56 = arith.constant 0 : index
    %93 = vector.load %arg13[%92, %c0_56] : memref<64x64xf32, #tpu.memory_space<vmem>>, vector<8x64xf32>
    %cst_57 = arith.constant dense<0.000000e+00> : vector<8x64xf32>
    %94 = tpu.matmul %89, %83, %cst_57 {dimension_numbers = #tpu.dot_dimension_numbers<[1], [0], [0], [1], [0, 0, 1, 1], [], []>} : vector<8x64xf32>, vector<64x64xf32>, vector<8x64xf32> -> vector<8x64xf32>
    %95 = arith.addf %93, %94 : vector<8x64xf32>
    %96 = math.tanh %95 : vector<8x64xf32>
    %97 = arith.index_cast %91 : i32 to index
    %c0_58 = arith.constant 0 : index
    %98 = vector.load %arg13[%97, %c0_58] : memref<64x64xf32, #tpu.memory_space<vmem>>, vector<8x64xf32>
    tpu.vector_store %arg13[%97, %c0_58], %96 {strides = array<i32>} : memref<64x64xf32, #tpu.memory_space<vmem>>, vector<8x64xf32>,
    %c1_i32_59 = arith.constant 1 : i32
    %c8_i32_60 = arith.constant 8 : i32
    %99 = arith.muli %c1_i32_59, %c8_i32_60 : i32
    %100 = tpu.assume_multiple %99, 8 : i32
    %101 = arith.index_cast %100 : i32 to index
    %c0_61 = arith.constant 0 : index
    %102 = vector.load %arg13[%101, %c0_61] : memref<64x64xf32, #tpu.memory_space<vmem>>, vector<8x64xf32>
    %cst_62 = arith.constant dense<0.000000e+00> : vector<8x64xf32>
    %103 = tpu.matmul %96, %83, %cst_62 {dimension_numbers = #tpu.dot_dimension_numbers<[1], [0], [0], [1], [0, 0, 1, 1], [], []>} : vector<8x64xf32>, vector<64x64xf32>, vector<8x64xf32> -> vector<8x64xf32>
    %104 = arith.addf %102, %103 : vector<8x64xf32>
    %105 = math.tanh %104 : vector<8x64xf32>
    %106 = arith.index_cast %100 : i32 to index
    %c0_63 = arith.constant 0 : index
    %107 = vector.load %arg13[%106, %c0_63] : memref<64x64xf32, #tpu.memory_space<vmem>>, vector<8x64xf32>
    tpu.vector_store %arg13[%106, %c0_63], %105 {strides = array<i32>} : memref<64x64xf32, #tpu.memory_space<vmem>>, vector<8x64xf32>,
    %c2_i32_64 = arith.constant 2 : i32
    %c8_i32_65 = arith.constant 8 : i32
    %108 = arith.muli %c2_i32_64, %c8_i32_65 : i32
    %109 = tpu.assume_multiple %108, 8 : i32
    %110 = arith.index_cast %109 : i32 to index
    %c0_66 = arith.constant 0 : index
    %111 = vector.load %arg13[%110, %c0_66] : memref<64x64xf32, #tpu.memory_space<vmem>>, vector<8x64xf32>
    %cst_67 = arith.constant dense<0.000000e+00> : vector<8x64xf32>
    %112 = tpu.matmul %105, %83, %cst_67 {dimension_numbers = #tpu.dot_dimension_numbers<[1], [0], [0], [1], [0, 0, 1, 1], [], []>} : vector<8x64xf32>, vector<64x64xf32>, vector<8x64xf32> -> vector<8x64xf32>
    %113 = arith.addf %111, %112 : vector<8x64xf32>
    %114 = math.tanh %113 : vector<8x64xf32>
    %115 = arith.index_cast %109 : i32 to index
    %c0_68 = arith.constant 0 : index
    %116 = vector.load %arg13[%115, %c0_68] : memref<64x64xf32, #tpu.memory_space<vmem>>, vector<8x64xf32>
    tpu.vector_store %arg13[%115, %c0_68], %114 {strides = array<i32>} : memref<64x64xf32, #tpu.memory_space<vmem>>, vector<8x64xf32>,
    %c3_i32_69 = arith.constant 3 : i32
    %c8_i32_70 = arith.constant 8 : i32
    %117 = arith.muli %c3_i32_69, %c8_i32_70 : i32
    %118 = tpu.assume_multiple %117, 8 : i32
    %119 = arith.index_cast %118 : i32 to index
    %c0_71 = arith.constant 0 : index
    %120 = vector.load %arg13[%119, %c0_71] : memref<64x64xf32, #tpu.memory_space<vmem>>, vector<8x64xf32>
    %cst_72 = arith.constant dense<0.000000e+00> : vector<8x64xf32>
    %121 = tpu.matmul %114, %83, %cst_72 {dimension_numbers = #tpu.dot_dimension_numbers<[1], [0], [0], [1], [0, 0, 1, 1], [], []>} : vector<8x64xf32>, vector<64x64xf32>, vector<8x64xf32> -> vector<8x64xf32>
    %122 = arith.addf %120, %121 : vector<8x64xf32>
    %123 = math.tanh %122 : vector<8x64xf32>
    %124 = arith.index_cast %118 : i32 to index
    %c0_73 = arith.constant 0 : index
    %125 = vector.load %arg13[%124, %c0_73] : memref<64x64xf32, #tpu.memory_space<vmem>>, vector<8x64xf32>
    tpu.vector_store %arg13[%124, %c0_73], %123 {strides = array<i32>} : memref<64x64xf32, #tpu.memory_space<vmem>>, vector<8x64xf32>,
    %c4_i32_74 = arith.constant 4 : i32
    %c8_i32_75 = arith.constant 8 : i32
    %126 = arith.muli %c4_i32_74, %c8_i32_75 : i32
    %127 = tpu.assume_multiple %126, 8 : i32
    %128 = arith.index_cast %127 : i32 to index
    %c0_76 = arith.constant 0 : index
    %129 = vector.load %arg13[%128, %c0_76] : memref<64x64xf32, #tpu.memory_space<vmem>>, vector<8x64xf32>
    %cst_77 = arith.constant dense<0.000000e+00> : vector<8x64xf32>
    %130 = tpu.matmul %123, %83, %cst_77 {dimension_numbers = #tpu.dot_dimension_numbers<[1], [0], [0], [1], [0, 0, 1, 1], [], []>} : vector<8x64xf32>, vector<64x64xf32>, vector<8x64xf32> -> vector<8x64xf32>
    %131 = arith.addf %129, %130 : vector<8x64xf32>
    %132 = math.tanh %131 : vector<8x64xf32>
    %133 = arith.index_cast %127 : i32 to index
    %c0_78 = arith.constant 0 : index
    %134 = vector.load %arg13[%133, %c0_78] : memref<64x64xf32, #tpu.memory_space<vmem>>, vector<8x64xf32>
    tpu.vector_store %arg13[%133, %c0_78], %132 {strides = array<i32>} : memref<64x64xf32, #tpu.memory_space<vmem>>, vector<8x64xf32>,
    %c5_i32_79 = arith.constant 5 : i32
    %c8_i32_80 = arith.constant 8 : i32
    %135 = arith.muli %c5_i32_79, %c8_i32_80 : i32
    %136 = tpu.assume_multiple %135, 8 : i32
    %137 = arith.index_cast %136 : i32 to index
    %c0_81 = arith.constant 0 : index
    %138 = vector.load %arg13[%137, %c0_81] : memref<64x64xf32, #tpu.memory_space<vmem>>, vector<8x64xf32>
    %cst_82 = arith.constant dense<0.000000e+00> : vector<8x64xf32>
    %139 = tpu.matmul %132, %83, %cst_82 {dimension_numbers = #tpu.dot_dimension_numbers<[1], [0], [0], [1], [0, 0, 1, 1], [], []>} : vector<8x64xf32>, vector<64x64xf32>, vector<8x64xf32> -> vector<8x64xf32>
    %140 = arith.addf %138, %139 : vector<8x64xf32>
    %141 = math.tanh %140 : vector<8x64xf32>
    %142 = arith.index_cast %136 : i32 to index
    %c0_83 = arith.constant 0 : index
    %143 = vector.load %arg13[%142, %c0_83] : memref<64x64xf32, #tpu.memory_space<vmem>>, vector<8x64xf32>
    tpu.vector_store %arg13[%142, %c0_83], %141 {strides = array<i32>} : memref<64x64xf32, #tpu.memory_space<vmem>>, vector<8x64xf32>,
    %c6_i32_84 = arith.constant 6 : i32
    %c8_i32_85 = arith.constant 8 : i32
    %144 = arith.muli %c6_i32_84, %c8_i32_85 : i32
    %145 = tpu.assume_multiple %144, 8 : i32
    %146 = arith.index_cast %145 : i32 to index
    %c0_86 = arith.constant 0 : index
    %147 = vector.load %arg13[%146, %c0_86] : memref<64x64xf32, #tpu.memory_space<vmem>>, vector<8x64xf32>
    %cst_87 = arith.constant dense<0.000000e+00> : vector<8x64xf32>
    %148 = tpu.matmul %141, %83, %cst_87 {dimension_numbers = #tpu.dot_dimension_numbers<[1], [0], [0], [1], [0, 0, 1, 1], [], []>} : vector<8x64xf32>, vector<64x64xf32>, vector<8x64xf32> -> vector<8x64xf32>
    %149 = arith.addf %147, %148 : vector<8x64xf32>
    %150 = math.tanh %149 : vector<8x64xf32>
    %151 = arith.index_cast %145 : i32 to index
    %c0_88 = arith.constant 0 : index
    %152 = vector.load %arg13[%151, %c0_88] : memref<64x64xf32, #tpu.memory_space<vmem>>, vector<8x64xf32>
    tpu.vector_store %arg13[%151, %c0_88], %150 {strides = array<i32>} : memref<64x64xf32, #tpu.memory_space<vmem>>, vector<8x64xf32>,
    %c7_i32_89 = arith.constant 7 : i32
    %c8_i32_90 = arith.constant 8 : i32
    %153 = arith.muli %c7_i32_89, %c8_i32_90 : i32
    %154 = tpu.assume_multiple %153, 8 : i32
    %155 = arith.index_cast %154 : i32 to index
    %c0_91 = arith.constant 0 : index
    %156 = vector.load %arg13[%155, %c0_91] : memref<64x64xf32, #tpu.memory_space<vmem>>, vector<8x64xf32>
    %cst_92 = arith.constant dense<0.000000e+00> : vector<8x64xf32>
    %157 = tpu.matmul %150, %83, %cst_92 {dimension_numbers = #tpu.dot_dimension_numbers<[1], [0], [0], [1], [0, 0, 1, 1], [], []>} : vector<8x64xf32>, vector<64x64xf32>, vector<8x64xf32> -> vector<8x64xf32>
    %158 = arith.addf %156, %157 : vector<8x64xf32>
    %159 = math.tanh %158 : vector<8x64xf32>
    %160 = arith.index_cast %154 : i32 to index
    %c0_93 = arith.constant 0 : index
    %161 = vector.load %arg13[%160, %c0_93] : memref<64x64xf32, #tpu.memory_space<vmem>>, vector<8x64xf32>
    tpu.vector_store %arg13[%160, %c0_93], %159 {strides = array<i32>} : memref<64x64xf32, #tpu.memory_space<vmem>>, vector<8x64xf32>,
    %c8_i32_94 = arith.constant 8 : i32
    %c0_95 = arith.constant 0 : index
    %c0_96 = arith.constant 0 : index
    %162 = vector.load %arg13[%c0_95, %c0_96] : memref<64x64xf32, #tpu.memory_space<vmem>>, vector<64x64xf32>
    %c0_97 = arith.constant 0 : index
    %c0_98 = arith.constant 0 : index
    %163 = vector.load %arg7[%c0_97, %c0_98] : memref<64x64xf32, #tpu.memory_space<vmem>>, vector<64x64xf32>
    %c0_99 = arith.constant 0 : index
    %c0_100 = arith.constant 0 : index
    %164 = vector.load %arg8[%c0_99, %c0_100] : memref<64x64xf32, #tpu.memory_space<vmem>>, vector<64x64xf32>
    %c0_101 = arith.constant 0 : index
    %c0_102 = arith.constant 0 : index
    %165 = vector.load %arg9[%c0_101, %c0_102] : memref<1x64xf32, #tpu.memory_space<vmem>>, vector<1x64xf32>
    %cst_103 = arith.constant dense<0.000000e+00> : vector<64x64xf32>
    %166 = tpu.matmul %162, %163, %cst_103 {dimension_numbers = #tpu.dot_dimension_numbers<[1], [0], [0], [1], [0, 0, 1, 1], [], []>} : vector<64x64xf32>, vector<64x64xf32>, vector<64x64xf32> -> vector<64x64xf32>
    %167 = vector.broadcast %165 : vector<1x64xf32> to vector<64x64xf32>
    %168 = arith.addf %166, %167 : vector<64x64xf32>
    %c0_104 = arith.constant 0 : index
    %c0_105 = arith.constant 0 : index
    %169 = vector.load %arg13[%c0_104, %c0_105] : memref<64x64xf32, #tpu.memory_space<vmem>>, vector<64x64xf32>
    tpu.vector_store %arg13[%c0_104, %c0_105], %168 {strides = array<i32>} : memref<64x64xf32, #tpu.memory_space<vmem>>, vector<64x64xf32>,
    %cst_106 = arith.constant 0.000000e+00 : f32
    %170 = vector.broadcast %cst_106 : f32 to vector<8x64xf32>
    %cst_107 = arith.constant 0.000000e+00 : f32
    %171 = vector.broadcast %cst_107 : f32 to vector<8x2xf32>
    %c0_i32_108 = arith.constant 0 : i32
    %c8_i32_109 = arith.constant 8 : i32
    %172 = arith.muli %c0_i32_108, %c8_i32_109 : i32
    %173 = tpu.assume_multiple %172, 8 : i32
    %174 = arith.index_cast %173 : i32 to index
    %c0_110 = arith.constant 0 : index
    %175 = vector.load %arg13[%174, %c0_110] : memref<64x64xf32, #tpu.memory_space<vmem>>, vector<8x64xf32>
    %cst_111 = arith.constant dense<0.000000e+00> : vector<8x64xf32>
    %176 = tpu.matmul %170, %164, %cst_111 {dimension_numbers = #tpu.dot_dimension_numbers<[1], [0], [0], [1], [0, 0, 1, 1], [], []>} : vector<8x64xf32>, vector<64x64xf32>, vector<8x64xf32> -> vector<8x64xf32>
    %177 = arith.addf %175, %176 : vector<8x64xf32>
    %178 = math.tanh %177 : vector<8x64xf32>
    %179 = arith.index_cast %c0_i32_108 : i32 to index
    %c0_112 = arith.constant 0 : index
    %c0_113 = arith.constant 0 : index
    %180 = vector.load %arg10[%179, %c0_112, %c0_113] : memref<8x64x2xf32, #tpu.memory_space<vmem>>, vector<1x64x2xf32>
    %181 = vector.shape_cast %180 : vector<1x64x2xf32> to vector<64x2xf32>
    %cst_114 = arith.constant dense<0.000000e+00> : vector<8x2xf32>
    %182 = tpu.matmul %178, %181, %cst_114 {dimension_numbers = #tpu.dot_dimension_numbers<[1], [0], [0], [1], [0, 0, 1, 1], [], []>} : vector<8x64xf32>, vector<64x2xf32>, vector<8x2xf32> -> vector<8x2xf32>
    %183 = arith.addf %171, %182 : vector<8x2xf32>
    %c1_i32_115 = arith.constant 1 : i32
    %c8_i32_116 = arith.constant 8 : i32
    %184 = arith.muli %c1_i32_115, %c8_i32_116 : i32
    %185 = tpu.assume_multiple %184, 8 : i32
    %186 = arith.index_cast %185 : i32 to index
    %c0_117 = arith.constant 0 : index
    %187 = vector.load %arg13[%186, %c0_117] : memref<64x64xf32, #tpu.memory_space<vmem>>, vector<8x64xf32>
    %cst_118 = arith.constant dense<0.000000e+00> : vector<8x64xf32>
    %188 = tpu.matmul %178, %164, %cst_118 {dimension_numbers = #tpu.dot_dimension_numbers<[1], [0], [0], [1], [0, 0, 1, 1], [], []>} : vector<8x64xf32>, vector<64x64xf32>, vector<8x64xf32> -> vector<8x64xf32>
    %189 = arith.addf %187, %188 : vector<8x64xf32>
    %190 = math.tanh %189 : vector<8x64xf32>
    %191 = arith.index_cast %c1_i32_115 : i32 to index
    %c0_119 = arith.constant 0 : index
    %c0_120 = arith.constant 0 : index
    %192 = vector.load %arg10[%191, %c0_119, %c0_120] : memref<8x64x2xf32, #tpu.memory_space<vmem>>, vector<1x64x2xf32>
    %193 = vector.shape_cast %192 : vector<1x64x2xf32> to vector<64x2xf32>
    %cst_121 = arith.constant dense<0.000000e+00> : vector<8x2xf32>
    %194 = tpu.matmul %190, %193, %cst_121 {dimension_numbers = #tpu.dot_dimension_numbers<[1], [0], [0], [1], [0, 0, 1, 1], [], []>} : vector<8x64xf32>, vector<64x2xf32>, vector<8x2xf32> -> vector<8x2xf32>
    %195 = arith.addf %183, %194 : vector<8x2xf32>
    %c2_i32_122 = arith.constant 2 : i32
    %c8_i32_123 = arith.constant 8 : i32
    %196 = arith.muli %c2_i32_122, %c8_i32_123 : i32
    %197 = tpu.assume_multiple %196, 8 : i32
    %198 = arith.index_cast %197 : i32 to index
    %c0_124 = arith.constant 0 : index
    %199 = vector.load %arg13[%198, %c0_124] : memref<64x64xf32, #tpu.memory_space<vmem>>, vector<8x64xf32>
    %cst_125 = arith.constant dense<0.000000e+00> : vector<8x64xf32>
    %200 = tpu.matmul %190, %164, %cst_125 {dimension_numbers = #tpu.dot_dimension_numbers<[1], [0], [0], [1], [0, 0, 1, 1], [], []>} : vector<8x64xf32>, vector<64x64xf32>, vector<8x64xf32> -> vector<8x64xf32>
    %201 = arith.addf %199, %200 : vector<8x64xf32>
    %202 = math.tanh %201 : vector<8x64xf32>
    %203 = arith.index_cast %c2_i32_122 : i32 to index
    %c0_126 = arith.constant 0 : index
    %c0_127 = arith.constant 0 : index
    %204 = vector.load %arg10[%203, %c0_126, %c0_127] : memref<8x64x2xf32, #tpu.memory_space<vmem>>, vector<1x64x2xf32>
    %205 = vector.shape_cast %204 : vector<1x64x2xf32> to vector<64x2xf32>
    %cst_128 = arith.constant dense<0.000000e+00> : vector<8x2xf32>
    %206 = tpu.matmul %202, %205, %cst_128 {dimension_numbers = #tpu.dot_dimension_numbers<[1], [0], [0], [1], [0, 0, 1, 1], [], []>} : vector<8x64xf32>, vector<64x2xf32>, vector<8x2xf32> -> vector<8x2xf32>
    %207 = arith.addf %195, %206 : vector<8x2xf32>
    %c3_i32_129 = arith.constant 3 : i32
    %c8_i32_130 = arith.constant 8 : i32
    %208 = arith.muli %c3_i32_129, %c8_i32_130 : i32
    %209 = tpu.assume_multiple %208, 8 : i32
    %210 = arith.index_cast %209 : i32 to index
    %c0_131 = arith.constant 0 : index
    %211 = vector.load %arg13[%210, %c0_131] : memref<64x64xf32, #tpu.memory_space<vmem>>, vector<8x64xf32>
    %cst_132 = arith.constant dense<0.000000e+00> : vector<8x64xf32>
    %212 = tpu.matmul %202, %164, %cst_132 {dimension_numbers = #tpu.dot_dimension_numbers<[1], [0], [0], [1], [0, 0, 1, 1], [], []>} : vector<8x64xf32>, vector<64x64xf32>, vector<8x64xf32> -> vector<8x64xf32>
    %213 = arith.addf %211, %212 : vector<8x64xf32>
    %214 = math.tanh %213 : vector<8x64xf32>
    %215 = arith.index_cast %c3_i32_129 : i32 to index
    %c0_133 = arith.constant 0 : index
    %c0_134 = arith.constant 0 : index
    %216 = vector.load %arg10[%215, %c0_133, %c0_134] : memref<8x64x2xf32, #tpu.memory_space<vmem>>, vector<1x64x2xf32>
    %217 = vector.shape_cast %216 : vector<1x64x2xf32> to vector<64x2xf32>
    %cst_135 = arith.constant dense<0.000000e+00> : vector<8x2xf32>
    %218 = tpu.matmul %214, %217, %cst_135 {dimension_numbers = #tpu.dot_dimension_numbers<[1], [0], [0], [1], [0, 0, 1, 1], [], []>} : vector<8x64xf32>, vector<64x2xf32>, vector<8x2xf32> -> vector<8x2xf32>
    %219 = arith.addf %207, %218 : vector<8x2xf32>
    %c4_i32_136 = arith.constant 4 : i32
    %c8_i32_137 = arith.constant 8 : i32
    %220 = arith.muli %c4_i32_136, %c8_i32_137 : i32
    %221 = tpu.assume_multiple %220, 8 : i32
    %222 = arith.index_cast %221 : i32 to index
    %c0_138 = arith.constant 0 : index
    %223 = vector.load %arg13[%222, %c0_138] : memref<64x64xf32, #tpu.memory_space<vmem>>, vector<8x64xf32>
    %cst_139 = arith.constant dense<0.000000e+00> : vector<8x64xf32>
    %224 = tpu.matmul %214, %164, %cst_139 {dimension_numbers = #tpu.dot_dimension_numbers<[1], [0], [0], [1], [0, 0, 1, 1], [], []>} : vector<8x64xf32>, vector<64x64xf32>, vector<8x64xf32> -> vector<8x64xf32>
    %225 = arith.addf %223, %224 : vector<8x64xf32>
    %226 = math.tanh %225 : vector<8x64xf32>
    %227 = arith.index_cast %c4_i32_136 : i32 to index
    %c0_140 = arith.constant 0 : index
    %c0_141 = arith.constant 0 : index
    %228 = vector.load %arg10[%227, %c0_140, %c0_141] : memref<8x64x2xf32, #tpu.memory_space<vmem>>, vector<1x64x2xf32>
    %229 = vector.shape_cast %228 : vector<1x64x2xf32> to vector<64x2xf32>
    %cst_142 = arith.constant dense<0.000000e+00> : vector<8x2xf32>
    %230 = tpu.matmul %226, %229, %cst_142 {dimension_numbers = #tpu.dot_dimension_numbers<[1], [0], [0], [1], [0, 0, 1, 1], [], []>} : vector<8x64xf32>, vector<64x2xf32>, vector<8x2xf32> -> vector<8x2xf32>
    %231 = arith.addf %219, %230 : vector<8x2xf32>
    %c5_i32_143 = arith.constant 5 : i32
    %c8_i32_144 = arith.constant 8 : i32
    %232 = arith.muli %c5_i32_143, %c8_i32_144 : i32
    %233 = tpu.assume_multiple %232, 8 : i32
    %234 = arith.index_cast %233 : i32 to index
    %c0_145 = arith.constant 0 : index
    %235 = vector.load %arg13[%234, %c0_145] : memref<64x64xf32, #tpu.memory_space<vmem>>, vector<8x64xf32>
    %cst_146 = arith.constant dense<0.000000e+00> : vector<8x64xf32>
    %236 = tpu.matmul %226, %164, %cst_146 {dimension_numbers = #tpu.dot_dimension_numbers<[1], [0], [0], [1], [0, 0, 1, 1], [], []>} : vector<8x64xf32>, vector<64x64xf32>, vector<8x64xf32> -> vector<8x64xf32>
    %237 = arith.addf %235, %236 : vector<8x64xf32>
    %238 = math.tanh %237 : vector<8x64xf32>
    %239 = arith.index_cast %c5_i32_143 : i32 to index
    %c0_147 = arith.constant 0 : index
    %c0_148 = arith.constant 0 : index
    %240 = vector.load %arg10[%239, %c0_147, %c0_148] : memref<8x64x2xf32, #tpu.memory_space<vmem>>, vector<1x64x2xf32>
    %241 = vector.shape_cast %240 : vector<1x64x2xf32> to vector<64x2xf32>
    %cst_149 = arith.constant dense<0.000000e+00> : vector<8x2xf32>
    %242 = tpu.matmul %238, %241, %cst_149 {dimension_numbers = #tpu.dot_dimension_numbers<[1], [0], [0], [1], [0, 0, 1, 1], [], []>} : vector<8x64xf32>, vector<64x2xf32>, vector<8x2xf32> -> vector<8x2xf32>
    %243 = arith.addf %231, %242 : vector<8x2xf32>
    %c6_i32_150 = arith.constant 6 : i32
    %c8_i32_151 = arith.constant 8 : i32
    %244 = arith.muli %c6_i32_150, %c8_i32_151 : i32
    %245 = tpu.assume_multiple %244, 8 : i32
    %246 = arith.index_cast %245 : i32 to index
    %c0_152 = arith.constant 0 : index
    %247 = vector.load %arg13[%246, %c0_152] : memref<64x64xf32, #tpu.memory_space<vmem>>, vector<8x64xf32>
    %cst_153 = arith.constant dense<0.000000e+00> : vector<8x64xf32>
    %248 = tpu.matmul %238, %164, %cst_153 {dimension_numbers = #tpu.dot_dimension_numbers<[1], [0], [0], [1], [0, 0, 1, 1], [], []>} : vector<8x64xf32>, vector<64x64xf32>, vector<8x64xf32> -> vector<8x64xf32>
    %249 = arith.addf %247, %248 : vector<8x64xf32>
    %250 = math.tanh %249 : vector<8x64xf32>
    %251 = arith.index_cast %c6_i32_150 : i32 to index
    %c0_154 = arith.constant 0 : index
    %c0_155 = arith.constant 0 : index
    %252 = vector.load %arg10[%251, %c0_154, %c0_155] : memref<8x64x2xf32, #tpu.memory_space<vmem>>, vector<1x64x2xf32>
    %253 = vector.shape_cast %252 : vector<1x64x2xf32> to vector<64x2xf32>
    %cst_156 = arith.constant dense<0.000000e+00> : vector<8x2xf32>
    %254 = tpu.matmul %250, %253, %cst_156 {dimension_numbers = #tpu.dot_dimension_numbers<[1], [0], [0], [1], [0, 0, 1, 1], [], []>} : vector<8x64xf32>, vector<64x2xf32>, vector<8x2xf32> -> vector<8x2xf32>
    %255 = arith.addf %243, %254 : vector<8x2xf32>
    %c7_i32_157 = arith.constant 7 : i32
    %c8_i32_158 = arith.constant 8 : i32
    %256 = arith.muli %c7_i32_157, %c8_i32_158 : i32
    %257 = tpu.assume_multiple %256, 8 : i32
    %258 = arith.index_cast %257 : i32 to index
    %c0_159 = arith.constant 0 : index
    %259 = vector.load %arg13[%258, %c0_159] : memref<64x64xf32, #tpu.memory_space<vmem>>, vector<8x64xf32>
    %cst_160 = arith.constant dense<0.000000e+00> : vector<8x64xf32>
    %260 = tpu.matmul %250, %164, %cst_160 {dimension_numbers = #tpu.dot_dimension_numbers<[1], [0], [0], [1], [0, 0, 1, 1], [], []>} : vector<8x64xf32>, vector<64x64xf32>, vector<8x64xf32> -> vector<8x64xf32>
    %261 = arith.addf %259, %260 : vector<8x64xf32>
    %262 = math.tanh %261 : vector<8x64xf32>
    %263 = arith.index_cast %c7_i32_157 : i32 to index
    %c0_161 = arith.constant 0 : index
    %c0_162 = arith.constant 0 : index
    %264 = vector.load %arg10[%263, %c0_161, %c0_162] : memref<8x64x2xf32, #tpu.memory_space<vmem>>, vector<1x64x2xf32>
    %265 = vector.shape_cast %264 : vector<1x64x2xf32> to vector<64x2xf32>
    %cst_163 = arith.constant dense<0.000000e+00> : vector<8x2xf32>
    %266 = tpu.matmul %262, %265, %cst_163 {dimension_numbers = #tpu.dot_dimension_numbers<[1], [0], [0], [1], [0, 0, 1, 1], [], []>} : vector<8x64xf32>, vector<64x2xf32>, vector<8x2xf32> -> vector<8x2xf32>
    %267 = arith.addf %255, %266 : vector<8x2xf32>
    %c8_i32_164 = arith.constant 8 : i32
    %c0_165 = arith.constant 0 : index
    %c0_166 = arith.constant 0 : index
    %268 = vector.load %arg11[%c0_165, %c0_166] : memref<1x2xf32, #tpu.memory_space<vmem>>, vector<1x2xf32>
    %269 = vector.broadcast %268 : vector<1x2xf32> to vector<8x2xf32>
    %270 = arith.addf %267, %269 : vector<8x2xf32>
    %c0_167 = arith.constant 0 : index
    %c0_168 = arith.constant 0 : index
    %271 = vector.load %arg12[%c0_167, %c0_168] : memref<8x2xf32, #tpu.memory_space<vmem>>, vector<8x2xf32>
    tpu.vector_store %arg12[%c0_167, %c0_168], %270 {strides = array<i32>} : memref<8x2xf32, #tpu.memory_space<vmem>>, vector<8x2xf32>,
    return
  }
}

</mosaic_0001>

<bundles_post_ra>
// kernel: rnn_forward.1
= control target key start
LH: loop header
LB: loop body
LE: loop exit
PB: predicated region body
PF: predicated region fallthrough
CT: control target
= control target key end

     0   :  { %v4232_v2 = vmov 0.0   ;;  %vm4233_vm0 = vmmov 0   ;;  %vm72_vm1 = vcmask 523264   ;;  %vm3035_vm2 = vcmask 15360   ;;  %s5353_s1 = inlined_call_operand.vmem [shape: f32[64,64], index: 1, kind: input, shape index: {}]   ;;  %s5354_s2 = inlined_call_operand.vmem [shape: f32[64,64], index: 2, kind: input, shape index: {}]   ;;  %s5355_s0 = inlined_call_operand.vmem [shape: f32[64,64], index: 0, kind: input, shape index: {}]   ;;  %s5356_s3 = inlined_call_operand.vmem [shape: f32[1,64], index: 3, kind: input, shape index: {}]   ;;  %s5357_s4 = inlined_call_operand.vmem [shape: f32[64,64], index: 4, kind: input, shape index: {}]   ;;  %s5358_s5 = inlined_call_operand.vmem [shape: f32[64,64], index: 5, kind: input, shape index: {}]   ;;  %s5359_s6 = inlined_call_operand.vmem [shape: f32[1,64], index: 6, kind: input, shape index: {}]   ;;  %s5360_s7 = inlined_call_operand.vmem [shape: f32[64,64], index: 7, kind: input, shape index: {}]   ;;  %s5361_s8 = inlined_call_operand.vmem [shape: f32[64,64], index: 8, kind: input, shape index: {}]   ;;  %s5362_s9 = inlined_call_operand.vmem [shape: f32[1,64], index: 9, kind: input, shape index: {}]   ;;  %s5363_s10 = inlined_call_operand.vmem [shape: f32[8,64,2], index: 10, kind: input, shape index: {}]   ;;  %s5364_s11 = inlined_call_operand.vmem [shape: f32[1,2], index: 11, kind: input, shape index: {}]   ;;  %s5365_s12 = inlined_call_operand.vmem [shape: f32[8,2], index: 12, kind: output, shape index: {}]  }
   0x1   :  { %v56_v0 = vld [vmem:[%s5353_s1 + $0x38] sm:$0xff]  ;;  %v55_v1 = vld [vmem:[%s5353_s1 + $0x30] sm:$0xff]  ;;  %3518 = vmatprep.subr.mxu1 %v4232_v2  ;;  %3534 = vmatprep.mubr.msk.f32.mxu1 %vm4233_vm0, %v4232_v2  ;;  %v54_v3 = vld [vmem:[%s5353_s1 + $0x28] sm:$0xff] }
   0x2   :  { %3490 = vmatprep.subr.mxu0 %v56_v0  ;;  %v4314_v4 = vld [vmem:[%s5354_s2 + $0x38] sm:$0xff]  ;;  %v4319_v5 = vld [vmem:[%s5354_s2 + $0x30] sm:$0xff]  ;;  %v53_v6 = vld [vmem:[%s5353_s1 + $0x20] sm:$0xff] }
   0x3   :  { %3491 = vmatpush3.msra.mxu0 %v56_v0  ;;  %3519 = vmatpush3.msra.mxu1 %v4314_v4  ;;  %v41_v7 = vld [vmem:[%s5355_s0] sm:$0xff]  ;;  %v4333_v8 = vld [vmem:[%s5354_s2 + $0x28] sm:$0xff]  ;;  %v52_v9 = vld [vmem:[%s5353_s1 + $0x18] sm:$0xff] }
   0x4   :  { %3492 = vmatprep.subr.mxu0 %v55_v1  ;;  %3520 = vmatprep.subr.mxu1 %v4232_v2  ;;  %v4343_v10 = vld [vmem:[%s5354_s2 + $0x20] sm:$0xff]  ;;  %v51_v11 = vld [vmem:[%s5353_s1 + $0x10] sm:$0xff]  ;;  %v4353_v12 = vld [vmem:[%s5354_s2 + $0x18] sm:$0xff] }
   0x5   :  { %3493 = vmatpush3.msra.mxu0 %v55_v1  ;;  %3521 = vmatpush3.msra.mxu1 %v4319_v5  ;;  %v50_v13 = vld [vmem:[%s5353_s1 + $0x8] sm:$0xff]  ;;  %v4363_v14 = vld [vmem:[%s5354_s2 + $0x10] sm:$0xff]  ;;  %v49_v15 = vld [vmem:[%s5353_s1] sm:$0xff] }
   0x6   :  { %3494 = vmatprep.subr.mxu0 %v54_v3  ;;  %3522 = vmatprep.subr.mxu1 %v4232_v2  ;;  %v4373_v16 = vld [vmem:[%s5354_s2 + $0x8] sm:$0xff]  ;;  %v4383_v18 = vld [vmem:[%s5354_s2] sm:$0xff]  ;;  %v43_v19 = vld [vmem:[%s5355_s0 + $0x10] sm:$0xff] }
   0x7   :  { %3495 = vmatpush3.msra.mxu0 %v54_v3  ;;  %3506 = vmatprep.mubr.msk.f32.mxu0 %vm72_vm1, %v41_v7  ;;  %v42_v17 = vld [vmem:[%s5355_s0 + $0x8] sm:$0xff]  ;;  %v44_v20 = vld [vmem:[%s5355_s0 + $0x18] sm:$0xff]  ;;  %v45_v21 = vld [vmem:[%s5355_s0 + $0x20] sm:$0xff] }
   0x8   :  { %3496 = vmatprep.subr.mxu0 %v53_v6  ;;  %3523 = vmatpush3.msra.mxu1 %v4333_v8  ;;  %v46_v22 = vld [vmem:[%s5355_s0 + $0x28] sm:$0xff]  ;;  %v47_v23 = vld [vmem:[%s5355_s0 + $0x30] sm:$0xff]  ;;  %v48_v24 = vld [vmem:[%s5355_s0 + $0x38] sm:$0xff] }
   0x9   :  { %3497 = vmatpush3.msra.mxu0 %v53_v6  ;;  %3524 = vmatprep.subr.mxu1 %v4232_v2  ;;  %v3041_v25 = vld [vmem:[%s5356_s3] ss:$0 sm:$0xff] }
   0xa   :  { %3498 = vmatprep.subr.mxu0 %v52_v9  ;;  %3525 = vmatpush3.msra.mxu1 %v4343_v10 }
   0xb   :  { %3499 = vmatpush3.msra.mxu0 %v52_v9  ;;  %3526 = vmatprep.subr.mxu1 %v4232_v2 }
   0xc   :  { %3500 = vmatprep.subr.mxu0 %v51_v11  ;;  %3527 = vmatpush3.msra.mxu1 %v4353_v12 }
   0xd   :  { %3501 = vmatpush3.msra.mxu0 %v51_v11  ;;  %3528 = vmatprep.subr.mxu1 %v4232_v2 }
   0xe   :  { %3502 = vmatprep.subr.mxu0 %v50_v13  ;;  %3529 = vmatpush3.msra.mxu1 %v4363_v14 }
   0xf   :  { %3503 = vmatpush3.msra.mxu0 %v50_v13  ;;  %3530 = vmatprep.subr.mxu1 %v4232_v2  ;;  %v845_v13 = vld [vmem:[%s5357_s4 + $0x20] sm:$0xff] }
  0x10   :  { %3504 = vmatprep.subr.mxu0 %v49_v15  ;;  %3531 = vmatpush3.msra.mxu1 %v4373_v16 }
  0x11   :  { %3505 = vmatpush3.msra.mxu0 %v49_v15  ;;  %3532 = vmatprep.subr.mxu1 %v4232_v2  ;;  %v843_v15 = vld [vmem:[%s5357_s4 + $0x10] sm:$0xff] }
  0x12   :  { %3507 = vmatmul.mubr.msk.f32.vlgmr.msra.gmra.mxu0 %vm72_vm1, %v42_v17  ;;  %3533 = vmatpush3.msra.mxu1 %v4383_v18  ;;  %v841_v17 = vld [vmem:[%s5357_s4] sm:$0xff] }
  0x13   :  { %3537 = vmatprep.subr.mxu0 %v4232_v2  ;;  %3535 = vmatmul.mubr.f32.vlgmr.msra.gmra.mxu1 %v4232_v2 }
  0x14   :  { %3538 = vmatpush3.msra.mxu0 %v4314_v4  ;;  %3556 = vmatprep.subr.mxu1 %v4232_v2 }
  0x15   :  { %3539 = vmatprep.subr.mxu0 %v4232_v2  ;;  %3557 = vmatpush3.msra.mxu1 %v4314_v4 }
  0x16   :  { %3540 = vmatpush3.msra.mxu0 %v4319_v5  ;;  %3558 = vmatprep.subr.mxu1 %v4232_v2 }
  0x17   :  { %3541 = vmatprep.subr.mxu0 %v4232_v2  ;;  %3559 = vmatpush3.msra.mxu1 %v4319_v5 }
  0x18   :  { %3542 = vmatpush3.msra.mxu0 %v4333_v8  ;;  %3560 = vmatprep.subr.mxu1 %v4232_v2 }
  0x19   :  { %3543 = vmatprep.subr.mxu0 %v4232_v2  ;;  %3561 = vmatpush3.msra.mxu1 %v4333_v8 }
  0x1a   :  { %3544 = vmatpush3.msra.mxu0 %v4343_v10  ;;  %3562 = vmatprep.subr.mxu1 %v4232_v2 }
  0x1b   :  { %3545 = vmatprep.subr.mxu0 %v4232_v2  ;;  %3563 = vmatpush3.msra.mxu1 %v4343_v10 }
  0x1c   :  { %3546 = vmatpush3.msra.mxu0 %v4353_v12  ;;  %3564 = vmatprep.subr.mxu1 %v4232_v2 }
  0x1d   :  { %3547 = vmatprep.subr.mxu0 %v4232_v2  ;;  %3565 = vmatpush3.msra.mxu1 %v4353_v12 }
  0x1e   :  { %3548 = vmatpush3.msra.mxu0 %v4363_v14  ;;  %3566 = vmatprep.subr.mxu1 %v4232_v2 }
  0x1f   :  { %3549 = vmatprep.subr.mxu0 %v4232_v2  ;;  %3567 = vmatpush3.msra.mxu1 %v4363_v14 }
  0x20   :  { %3550 = vmatpush3.msra.mxu0 %v4373_v16  ;;  %3568 = vmatprep.subr.mxu1 %v4232_v2 }
  0x21   :  { %3551 = vmatprep.subr.mxu0 %v4232_v2  ;;  %3569 = vmatpush3.msra.mxu1 %v4373_v16 }
  0x22   :  { %3552 = vmatpush3.msra.mxu0 %v4383_v18  ;;  %3570 = vmatprep.subr.mxu1 %v4232_v2 }
  0x23   :  { %3572 = vmatprep.mubr.msk.f32.mxu1 %vm4233_vm0, %v4232_v2  ;;  %3571 = vmatpush3.msra.mxu1 %v4383_v18 }
  0x24   :  { %3575 = vmatprep.subr.mxu0 %v4232_v2  ;;  %3594 = vmatprep.subr.mxu1 %v4232_v2 }
  0x25   :  { %3509 = vmatprep.mubr.msk.f32.mxu0 %vm72_vm1, %v43_v19 }
  0x26   :  { %3510 = vmatmul.mubr.msk.f32.gmra.mxu0 %vm72_vm1, %v44_v20 }
  0x27   :  { %3512 = vmatprep.mubr.msk.f32.mxu0 %vm72_vm1, %v45_v21 }
  0x2a   :  { %3513 = vmatmul.mubr.msk.f32.gmra.mxu0 %vm72_vm1, %v46_v22 }
  0x2b   :  { %3515 = vmatprep.mubr.msk.f32.mxu0 %vm72_vm1, %v47_v23  ;;  %v4598_v23 = vld [vmem:[%s5358_s5 + $0x38] sm:$0xff] }
  0x2e   :  { %3516 = vmatmul.mubr.msk.f32.gmra.mxu0 %vm72_vm1, %v48_v24  ;;  %v4604_v24 = vld [vmem:[%s5358_s5 + $0x30] sm:$0xff] }
  0x2f   :  { %3553 = vmatprep.mubr.msk.f32.mxu0 %vm4233_vm0, %v4232_v2 }
  0xd2   :  { %v3508_v26 = vpop.f32.mrf.mxu0 }
  0xd3   :  { %v169_v27 = vadd.f32 %v3508_v26, %v3041_v25  ;;  %v280_v29 = vpop.f32.mrf.mxu1  ;;  %v4618_v26 = vld [vmem:[%s5358_s5 + $0x20] sm:$0xff] }
  0xd4   :  { %v163_v28 = vpop.f32.mrf.mxu0 }
  0xd5   :  { %203 = vst.msk [vmem:[#allocation2 + $0x8] sm:$0xff] %vm72_vm1, %v169_v27  ;;  %v164_v30 = vadd.f32 %v3041_v25, %v163_v28  ;;  %v3536_v31 = vpop.f32.mrf.mxu1  ;;  %v4625_v27 = vld [vmem:[%s5358_s5 + $0x18] sm:$0xff]  ;;  %v4632_v28 = vld [vmem:[%s5358_s5 + $0x10] sm:$0xff] }
  0xd7   :  { %202 = vst.msk [vmem:[#allocation2] sm:$0xff] %vm72_vm1, %v164_v30  ;;  %v4646_v30 = vld [vmem:[%s5358_s5] sm:$0xff] }
  0xdc   :  { %v288_v47 = vld [vmem:[#allocation2 + $0x8] sm:$0xff] }
  0xde   :  { %v210_v32 = vld [vmem:[#allocation2] sm:$0xff] }
  0xdf   :  { %v284_v33 = vadd.f32 %v280_v29, %v210_v32  ;;  %v4639_v29 = vld [vmem:[%s5358_s5 + $0x8] sm:$0xff] }
  0xe1   :  { %4184 = vtanh.f32 %v284_v33 }
  0xe6   :  { %v3511_v35 = vpop.f32.mrf.mxu0 }
  0xe7   :  { %v179_v36 = vadd.f32 %v3511_v35, %v3041_v25  ;;  %v4654_v35 = vld [vmem:[%s5359_s6] ss:$0 sm:$0xff] }
  0xe8   :  { %v173_v37 = vpop.f32.mrf.mxu0 }
  0xe9   :  { %205 = vst.msk [vmem:[#allocation2 + $0x18] sm:$0xff] %vm72_vm1, %v179_v36  ;;  %v174_v38 = vadd.f32 %v3041_v25, %v173_v37 }
  0xea   :  { %v3514_v39 = vpop.f32.mrf.mxu0 }
  0xeb   :  { %204 = vst.msk [vmem:[#allocation2 + $0x10] sm:$0xff] %vm72_vm1, %v174_v38  ;;  %v189_v40 = vadd.f32 %v3514_v39, %v3041_v25 }
  0xec   :  { %v183_v41 = vpop.f32.mrf.mxu0 }
  0xed   :  { %207 = vst.msk [vmem:[#allocation2 + $0x28] sm:$0xff] %vm72_vm1, %v189_v40  ;;  %v184_v42 = vadd.f32 %v3041_v25, %v183_v41 }
  0xee   :  { %v4185_v34 = vpop.eup %4184  ;;  %v3517_v43 = vpop.f32.mrf.mxu0 }
  0xef   :  { %286 = vst.msk [vmem:[#allocation2] sm:$0xff] %vm72_vm1, %v4185_v34  ;;  %3554 = vmatmul.mubr.msk.f32.vlgmr.msra.gmra.mxu0 %vm72_vm1, %v4185_v34  ;;  %206 = vst.msk [vmem:[#allocation2 + $0x20] sm:$0xff] %vm72_vm1, %v184_v42  ;;  %v199_v44 = vadd.f32 %v3517_v43, %v3041_v25 }
  0xf0   :  { %3576 = vmatpush3.msra.mxu0 %v4314_v4  ;;  %3591 = vmatprep.mubr.msk.f32.mxu0 %vm4233_vm0, %v4232_v2  ;;  %v193_v45 = vpop.f32.mrf.mxu0  ;;  %v444_v57 = vld [vmem:[#allocation2 + $0x18] sm:$0xff] }
  0xf1   :  { %3577 = vmatprep.subr.mxu0 %v4232_v2  ;;  %209 = vst.msk [vmem:[#allocation2 + $0x38] sm:$0xff] %vm72_vm1, %v199_v44  ;;  %v194_v46 = vadd.f32 %v3041_v25, %v193_v45  ;;  %v4611_v25 = vld [vmem:[%s5358_s5 + $0x28] sm:$0xff] }
  0xf2   :  { %3578 = vmatpush3.msra.mxu0 %v4319_v5  ;;  %v366_v52 = vld [vmem:[#allocation2 + $0x10] sm:$0xff] }
  0xf3   :  { %3579 = vmatprep.subr.mxu0 %v4232_v2  ;;  %208 = vst.msk [vmem:[#allocation2 + $0x30] sm:$0xff] %vm72_vm1, %v194_v46 }
  0xf4   :  { %3580 = vmatpush3.msra.mxu0 %v4333_v8 }
  0xf5   :  { %3581 = vmatprep.subr.mxu0 %v4232_v2 }
  0xf6   :  { %3582 = vmatpush3.msra.mxu0 %v4343_v10  ;;  %v522_v62 = vld [vmem:[#allocation2 + $0x20] sm:$0xff] }
  0xf7   :  { %3583 = vmatprep.subr.mxu0 %v4232_v2  ;;  %v833_v11 = vld [vmem:[#allocation2] sm:$0xff] }
  0xf8   :  { %3584 = vmatpush3.msra.mxu0 %v4353_v12 }
  0xf9   :  { %3585 = vmatprep.subr.mxu0 %v4232_v2 }
  0xfa   :  { %3586 = vmatpush3.msra.mxu0 %v4363_v14  ;;  %v678_v31 = vld [vmem:[#allocation2 + $0x30] sm:$0xff] }
  0xfb   :  { %3587 = vmatprep.subr.mxu0 %v4232_v2 }
  0xfc   :  { %3588 = vmatpush3.msra.mxu0 %v4373_v16 }
  0xfd   :  { %3589 = vmatprep.subr.mxu0 %v4232_v2 }
  0xfe   :  { %3590 = vmatpush3.msra.mxu0 %v4383_v18 }
  0xff   :  { %3613 = vmatprep.subr.mxu0 %v4232_v2 }
 0x1af   :  { %v358_v48 = vpop.f32.mrf.mxu0 }
 0x1b0   :  { %v362_v49 = vadd.f32 %v358_v48, %v288_v47 }
 0x1b1   :  { %v3555_v50 = vpop.f32.mrf.mxu0 }
 0x1b2   :  { %4186 = vtanh.f32 %v362_v49  ;;  %v756_v50 = vld [vmem:[#allocation2 + $0x38] sm:$0xff] }
 0x1bf   :  { %v4187_v51 = vpop.eup %4186 }
 0x1c0   :  { %364 = vst.msk [vmem:[#allocation2 + $0x8] sm:$0xff] %vm72_vm1, %v4187_v51  ;;  %3573 = vmatmul.mubr.msk.f32.vlgmr.msra.gmra.mxu1 %vm72_vm1, %v4187_v51 }
 0x1c1   :  { %3595 = vmatpush3.msra.mxu1 %v4314_v4  ;;  %3610 = vmatprep.mubr.msk.f32.mxu1 %vm4233_vm0, %v4232_v2 }
 0x1c2   :  { %3596 = vmatprep.subr.mxu1 %v4232_v2 }
 0x1c3   :  { %3597 = vmatpush3.msra.mxu1 %v4319_v5 }
 0x1c4   :  { %3598 = vmatprep.subr.mxu1 %v4232_v2 }
 0x1c5   :  { %3599 = vmatpush3.msra.mxu1 %v4333_v8 }
 0x1c6   :  { %3600 = vmatprep.subr.mxu1 %v4232_v2 }
 0x1c7   :  { %3601 = vmatpush3.msra.mxu1 %v4343_v10 }
 0x1c8   :  { %3602 = vmatprep.subr.mxu1 %v4232_v2 }
 0x1c9   :  { %3603 = vmatpush3.msra.mxu1 %v4353_v12 }
 0x1ca   :  { %3604 = vmatprep.subr.mxu1 %v4232_v2 }
 0x1cb   :  { %3605 = vmatpush3.msra.mxu1 %v4363_v14 }
 0x1cc   :  { %3606 = vmatprep.subr.mxu1 %v4232_v2 }
 0x1cd   :  { %3607 = vmatpush3.msra.mxu1 %v4373_v16 }
 0x1ce   :  { %3608 = vmatprep.subr.mxu1 %v4232_v2 }
 0x1cf   :  { %3609 = vmatpush3.msra.mxu1 %v4383_v18 }
 0x1d0   :  { %3632 = vmatprep.subr.mxu1 %v4232_v2 }
 0x280   :  { %v436_v53 = vpop.f32.mrf.mxu1 }
 0x281   :  { %v440_v54 = vadd.f32 %v436_v53, %v366_v52 }
 0x282   :  { %v3574_v55 = vpop.f32.mrf.mxu1 }
 0x283   :  { %4188 = vtanh.f32 %v440_v54 }
 0x290   :  { %v4189_v56 = vpop.eup %4188 }
 0x291   :  { %442 = vst.msk [vmem:[#allocation2 + $0x10] sm:$0xff] %vm72_vm1, %v4189_v56  ;;  %3592 = vmatmul.mubr.msk.f32.vlgmr.msra.gmra.mxu0 %vm72_vm1, %v4189_v56 }
 0x292   :  { %3614 = vmatpush3.msra.mxu0 %v4314_v4  ;;  %3629 = vmatprep.mubr.msk.f32.mxu0 %vm4233_vm0, %v4232_v2 }
 0x293   :  { %3615 = vmatprep.subr.mxu0 %v4232_v2 }
 0x294   :  { %3616 = vmatpush3.msra.mxu0 %v4319_v5 }
 0x295   :  { %3617 = vmatprep.subr.mxu0 %v4232_v2 }
 0x296   :  { %3618 = vmatpush3.msra.mxu0 %v4333_v8 }
 0x297   :  { %3619 = vmatprep.subr.mxu0 %v4232_v2 }
 0x298   :  { %3620 = vmatpush3.msra.mxu0 %v4343_v10  ;;  %v835_v19 = vld [vmem:[#allocation2 + $0x10] sm:$0xff] }
 0x299   :  { %3621 = vmatprep.subr.mxu0 %v4232_v2 }
 0x29a   :  { %3622 = vmatpush3.msra.mxu0 %v4353_v12 }
 0x29b   :  { %3623 = vmatprep.subr.mxu0 %v4232_v2 }
 0x29c   :  { %3624 = vmatpush3.msra.mxu0 %v4363_v14 }
 0x29d   :  { %3625 = vmatprep.subr.mxu0 %v4232_v2 }
 0x29e   :  { %3626 = vmatpush3.msra.mxu0 %v4373_v16 }
 0x29f   :  { %3627 = vmatprep.subr.mxu0 %v4232_v2 }
 0x2a0   :  { %3628 = vmatpush3.msra.mxu0 %v4383_v18 }
 0x2a1   :  { %3651 = vmatprep.subr.mxu0 %v4232_v2 }
 0x351   :  { %v514_v58 = vpop.f32.mrf.mxu0 }
 0x352   :  { %v518_v59 = vadd.f32 %v514_v58, %v444_v57 }
 0x353   :  { %v3593_v60 = vpop.f32.mrf.mxu0 }
 0x354   :  { %4190 = vtanh.f32 %v518_v59 }
 0x361   :  { %v4191_v61 = vpop.eup %4190 }
 0x362   :  { %520 = vst.msk [vmem:[#allocation2 + $0x18] sm:$0xff] %vm72_vm1, %v4191_v61  ;;  %3611 = vmatmul.mubr.msk.f32.vlgmr.msra.gmra.mxu1 %vm72_vm1, %v4191_v61 }
 0x363   :  { %3633 = vmatpush3.msra.mxu1 %v4314_v4  ;;  %3648 = vmatprep.mubr.msk.f32.mxu1 %vm4233_vm0, %v4232_v2 }
 0x364   :  { %3634 = vmatprep.subr.mxu1 %v4232_v2 }
 0x365   :  { %3635 = vmatpush3.msra.mxu1 %v4319_v5 }
 0x366   :  { %3636 = vmatprep.subr.mxu1 %v4232_v2 }
 0x367   :  { %3637 = vmatpush3.msra.mxu1 %v4333_v8 }
 0x368   :  { %3638 = vmatprep.subr.mxu1 %v4232_v2 }
 0x369   :  { %3639 = vmatpush3.msra.mxu1 %v4343_v10  ;;  %v836_v20 = vld [vmem:[#allocation2 + $0x18] sm:$0xff] }
 0x36a   :  { %3640 = vmatprep.subr.mxu1 %v4232_v2 }
 0x36b   :  { %3641 = vmatpush3.msra.mxu1 %v4353_v12 }
 0x36c   :  { %3642 = vmatprep.subr.mxu1 %v4232_v2 }
 0x36d   :  { %3643 = vmatpush3.msra.mxu1 %v4363_v14 }
 0x36e   :  { %3644 = vmatprep.subr.mxu1 %v4232_v2 }
 0x36f   :  { %3645 = vmatpush3.msra.mxu1 %v4373_v16 }
 0x370   :  { %3646 = vmatprep.subr.mxu1 %v4232_v2 }
 0x371   :  { %3647 = vmatpush3.msra.mxu1 %v4383_v18 }
 0x422   :  { %v592_v63 = vpop.f32.mrf.mxu1 }
 0x423   :  { %v596_v0 = vadd.f32 %v592_v63, %v522_v62 }
 0x424   :  { %v3612_v1 = vpop.f32.mrf.mxu1 }
 0x425   :  { %4192 = vtanh.f32 %v596_v0 }
 0x432   :  { %v4193_v3 = vpop.eup %4192 }
 0x433   :  { %598 = vst.msk [vmem:[#allocation2 + $0x20] sm:$0xff] %vm72_vm1, %v4193_v3  ;;  %3630 = vmatmul.mubr.msk.f32.vlgmr.msra.gmra.mxu0 %vm72_vm1, %v4193_v3 }
 0x434   :  { %3652 = vmatpush3.msra.mxu0 %v4314_v4  ;;  %3667 = vmatprep.mubr.msk.f32.mxu0 %vm4233_vm0, %v4232_v2  ;;  %v848_v4 = vld [vmem:[%s5357_s4 + $0x38] sm:$0xff] }
 0x435   :  { %3653 = vmatprep.subr.mxu0 %v4232_v2  ;;  %3670 = vmatprep.subr.mxu1 %v848_v4 }
 0x436   :  { %3654 = vmatpush3.msra.mxu0 %v4319_v5  ;;  %v600_v5 = vld [vmem:[#allocation2 + $0x28] sm:$0xff] }
 0x437   :  { %3655 = vmatprep.subr.mxu0 %v4232_v2 }
 0x438   :  { %3656 = vmatpush3.msra.mxu0 %v4333_v8 }
 0x439   :  { %3657 = vmatprep.subr.mxu0 %v4232_v2 }
 0x43a   :  { %3658 = vmatpush3.msra.mxu0 %v4343_v10  ;;  %v847_v10 = vld [vmem:[%s5357_s4 + $0x30] sm:$0xff]  ;;  %v837_v21 = vld [vmem:[#allocation2 + $0x20] sm:$0xff] }
 0x43b   :  { %3659 = vmatprep.subr.mxu0 %v4232_v2 }
 0x43c   :  { %3660 = vmatpush3.msra.mxu0 %v4353_v12  ;;  %v846_v12 = vld [vmem:[%s5357_s4 + $0x28] sm:$0xff] }
 0x43d   :  { %3661 = vmatprep.subr.mxu0 %v4232_v2 }
 0x43e   :  { %3662 = vmatpush3.msra.mxu0 %v4363_v14  ;;  %v844_v14 = vld [vmem:[%s5357_s4 + $0x18] sm:$0xff] }
 0x43f   :  { %3663 = vmatprep.subr.mxu0 %v4232_v2 }
 0x440   :  { %3664 = vmatpush3.msra.mxu0 %v4373_v16  ;;  %v842_v16 = vld [vmem:[%s5357_s4 + $0x8] sm:$0xff] }
 0x441   :  { %3665 = vmatprep.subr.mxu0 %v4232_v2 }
 0x442   :  { %3666 = vmatpush3.msra.mxu0 %v4383_v18  ;;  %v834_v18 = vld [vmem:[#allocation2 + $0x8] sm:$0xff] }
 0x443   :  { %3698 = vmatprep.subr.mxu0 %v4232_v2 }
 0x4f3   :  { %v670_v6 = vpop.f32.mrf.mxu0 }
 0x4f4   :  { %v674_v7 = vadd.f32 %v670_v6, %v600_v5 }
 0x4f5   :  { %v3631_v8 = vpop.f32.mrf.mxu0 }
 0x4f6   :  { %4194 = vtanh.f32 %v674_v7 }
 0x503   :  { %v4195_v9 = vpop.eup %4194 }
 0x504   :  { %676 = vst.msk [vmem:[#allocation2 + $0x28] sm:$0xff] %vm72_vm1, %v4195_v9  ;;  %3649 = vmatmul.mubr.msk.f32.vlgmr.msra.gmra.mxu1 %vm72_vm1, %v4195_v9 }
 0x505   :  { %3671 = vmatpush3.msra.mxu1 %v848_v4  ;;  %3686 = vmatprep.mubr.msk.f32.mxu1 %vm72_vm1, %v833_v11 }
 0x506   :  { %3672 = vmatprep.subr.mxu1 %v847_v10 }
 0x507   :  { %3673 = vmatpush3.msra.mxu1 %v847_v10 }
 0x508   :  { %3674 = vmatprep.subr.mxu1 %v846_v12 }
 0x509   :  { %3675 = vmatpush3.msra.mxu1 %v846_v12 }
 0x50a   :  { %3676 = vmatprep.subr.mxu1 %v845_v13 }
 0x50b   :  { %3677 = vmatpush3.msra.mxu1 %v845_v13  ;;  %v838_v22 = vld [vmem:[#allocation2 + $0x28] sm:$0xff] }
 0x50c   :  { %3678 = vmatprep.subr.mxu1 %v844_v14 }
 0x50d   :  { %3679 = vmatpush3.msra.mxu1 %v844_v14 }
 0x50e   :  { %3680 = vmatprep.subr.mxu1 %v843_v15 }
 0x50f   :  { %3681 = vmatpush3.msra.mxu1 %v843_v15 }
 0x510   :  { %3682 = vmatprep.subr.mxu1 %v842_v16 }
 0x511   :  { %3683 = vmatpush3.msra.mxu1 %v842_v16 }
 0x512   :  { %3684 = vmatprep.subr.mxu1 %v841_v17 }
 0x513   :  { %3685 = vmatpush3.msra.mxu1 %v841_v17 }
 0x514   :  { %3687 = vmatmul.mubr.msk.f32.vlgmr.msra.gmra.mxu1 %vm72_vm1, %v834_v18  ;;  %3717 = vmatprep.subr.mxu1 %v4232_v2 }
 0x515   :  { %3689 = vmatprep.mubr.msk.f32.mxu1 %vm72_vm1, %v835_v19  ;;  %3718 = vmatpush3.msra.mxu1 %v4598_v23 }
 0x516   :  { %3719 = vmatprep.subr.mxu1 %v4232_v2 }
 0x517   :  { %3720 = vmatpush3.msra.mxu1 %v4604_v24 }
 0x518   :  { %3690 = vmatmul.mubr.msk.f32.gmra.mxu1 %vm72_vm1, %v836_v20  ;;  %3721 = vmatprep.subr.mxu1 %v4232_v2 }
 0x519   :  { %3692 = vmatprep.mubr.msk.f32.mxu1 %vm72_vm1, %v837_v21  ;;  %3722 = vmatpush3.msra.mxu1 %v4611_v25 }
 0x51a   :  { %3723 = vmatprep.subr.mxu1 %v4232_v2 }
 0x51b   :  { %3724 = vmatpush3.msra.mxu1 %v4618_v26 }
 0x51c   :  { %3693 = vmatmul.mubr.msk.f32.gmra.mxu1 %vm72_vm1, %v838_v22  ;;  %3725 = vmatprep.subr.mxu1 %v4232_v2  ;;  %v1629_v22 = vld [vmem:[%s5360_s7 + $0x38] sm:$0xff] }
 0x51d   :  { %3726 = vmatpush3.msra.mxu1 %v4625_v27 }
 0x51e   :  { %3727 = vmatprep.subr.mxu1 %v4232_v2 }
 0x51f   :  { %3728 = vmatpush3.msra.mxu1 %v4632_v28 }
 0x520   :  { %3729 = vmatprep.subr.mxu1 %v4232_v2 }
 0x521   :  { %3730 = vmatpush3.msra.mxu1 %v4639_v29 }
 0x522   :  { %3731 = vmatprep.subr.mxu1 %v4232_v2 }
 0x523   :  { %3732 = vmatpush3.msra.mxu1 %v4646_v30 }
 0x524   :  { %3755 = vmatprep.subr.mxu1 %v4232_v2 }
 0x5c4   :  { %v748_v32 = vpop.f32.mrf.mxu1 }
 0x5c5   :  { %v752_v33 = vadd.f32 %v748_v32, %v678_v31  ;;  %v1626_v31 = vld [vmem:[%s5360_s7 + $0x20] sm:$0xff]  ;;  %v1625_v32 = vld [vmem:[%s5360_s7 + $0x18] sm:$0xff] }
 0x5c6   :  { %v3650_v34 = vpop.f32.mrf.mxu1 }
 0x5c7   :  { %4196 = vtanh.f32 %v752_v33  ;;  %v1624_v33 = vld [vmem:[%s5360_s7 + $0x10] sm:$0xff]  ;;  %v1623_v34 = vld [vmem:[%s5360_s7 + $0x8] sm:$0xff] }
 0x5d4   :  { %v4197_v36 = vpop.eup %4196  ;;  %v3688_v37 = vpop.f32.mrf.mxu1 }
 0x5d5   :  { %754 = vst.msk [vmem:[#allocation2 + $0x30] sm:$0xff] %vm72_vm1, %v4197_v36  ;;  %v960_v38 = vadd.f32 %v3688_v37, %v4654_v35  ;;  %3668 = vmatmul.mubr.msk.f32.vlgmr.msra.gmra.mxu0 %vm72_vm1, %v4197_v36 }
 0x5d6   :  { %v954_v39 = vpop.f32.mrf.mxu1  ;;  %3699 = vmatpush3.msra.mxu0 %v4598_v23  ;;  %3714 = vmatprep.mubr.msk.f32.mxu0 %vm4233_vm0, %v4232_v2 }
 0x5d7   :  { %994 = vst.msk [vmem:[#allocation2 + $0x8] sm:$0xff] %vm72_vm1, %v960_v38  ;;  %v955_v40 = vadd.f32 %v4654_v35, %v954_v39  ;;  %3700 = vmatprep.subr.mxu0 %v4232_v2 }
 0x5d8   :  { %v3691_v41 = vpop.f32.mrf.mxu1  ;;  %3701 = vmatpush3.msra.mxu0 %v4604_v24 }
 0x5d9   :  { %993 = vst.msk [vmem:[#allocation2] sm:$0xff] %vm72_vm1, %v955_v40  ;;  %v970_v42 = vadd.f32 %v3691_v41, %v4654_v35  ;;  %3702 = vmatprep.subr.mxu0 %v4232_v2  ;;  %v4851_v41 = vld [vmem:[%s5361_s8 + $0x38] sm:$0xff] }
 0x5da   :  { %v964_v43 = vpop.f32.mrf.mxu1  ;;  %3703 = vmatpush3.msra.mxu0 %v4611_v25 }
 0x5db   :  { %996 = vst.msk [vmem:[#allocation2 + $0x18] sm:$0xff] %vm72_vm1, %v970_v42  ;;  %v965_v44 = vadd.f32 %v4654_v35, %v964_v43  ;;  %3704 = vmatprep.subr.mxu0 %v4232_v2  ;;  %v4857_v42 = vld [vmem:[%s5361_s8 + $0x30] sm:$0xff]  ;;  %v4864_v43 = vld [vmem:[%s5361_s8 + $0x28] sm:$0xff] }
 0x5dc   :  { %v3694_v45 = vpop.f32.mrf.mxu1  ;;  %3705 = vmatpush3.msra.mxu0 %v4618_v26  ;;  %v839_v46 = vld [vmem:[#allocation2 + $0x30] sm:$0xff] }
 0x5dd   :  { %995 = vst.msk [vmem:[#allocation2 + $0x10] sm:$0xff] %vm72_vm1, %v965_v44  ;;  %v980_v47 = vadd.f32 %v3694_v45, %v4654_v35  ;;  %3706 = vmatprep.subr.mxu0 %v4232_v2  ;;  %3695 = vmatprep.mubr.msk.f32.mxu1 %vm72_vm1, %v839_v46  ;;  %v4871_v44 = vld [vmem:[%s5361_s8 + $0x20] sm:$0xff]  ;;  %v4878_v45 = vld [vmem:[%s5361_s8 + $0x18] sm:$0xff]  ;;  %v4885_v46 = vld [vmem:[%s5361_s8 + $0x10] sm:$0xff] }
 0x5de   :  { %v974_v48 = vpop.f32.mrf.mxu1  ;;  %3707 = vmatpush3.msra.mxu0 %v4625_v27  ;;  %v1075_v1 = vld [vmem:[#allocation2 + $0x8] sm:$0xff] }
 0x5df   :  { %998 = vst.msk [vmem:[#allocation2 + $0x28] sm:$0xff] %vm72_vm1, %v980_v47  ;;  %v975_v49 = vadd.f32 %v4654_v35, %v974_v48  ;;  %3708 = vmatprep.subr.mxu0 %v4232_v2  ;;  %v4892_v47 = vld [vmem:[%s5361_s8 + $0x8] sm:$0xff]  ;;  %v4899_v48 = vld [vmem:[%s5361_s8] sm:$0xff] }
 0x5e0   :  { %3709 = vmatpush3.msra.mxu0 %v4632_v28  ;;  %v1001_v55 = vld [vmem:[#allocation2] sm:$0xff] }
 0x5e1   :  { %997 = vst.msk [vmem:[#allocation2 + $0x20] sm:$0xff] %vm72_vm1, %v975_v49  ;;  %3710 = vmatprep.subr.mxu0 %v4232_v2 }
 0x5e2   :  { %3711 = vmatpush3.msra.mxu0 %v4639_v29  ;;  %v1229_v12 = vld [vmem:[#allocation2 + $0x18] sm:$0xff] }
 0x5e3   :  { %3712 = vmatprep.subr.mxu0 %v4232_v2 }
 0x5e4   :  { %3713 = vmatpush3.msra.mxu0 %v4646_v30  ;;  %v1152_v7 = vld [vmem:[#allocation2 + $0x10] sm:$0xff] }
 0x5e5   :  { %3715 = vmatmul.mubr.f32.vlgmr.msra.gmra.mxu0 %v4232_v2  ;;  %3736 = vmatprep.subr.mxu0 %v4232_v2 }
 0x5e6   :  { %3737 = vmatpush3.msra.mxu0 %v4598_v23  ;;  %3752 = vmatprep.mubr.msk.f32.mxu0 %vm4233_vm0, %v4232_v2 }
 0x5e7   :  { %3738 = vmatprep.subr.mxu0 %v4232_v2 }
 0x5e8   :  { %3739 = vmatpush3.msra.mxu0 %v4604_v24  ;;  %v1306_v17 = vld [vmem:[#allocation2 + $0x20] sm:$0xff] }
 0x5e9   :  { %3740 = vmatprep.subr.mxu0 %v4232_v2 }
 0x5ea   :  { %3741 = vmatpush3.msra.mxu0 %v4611_v25 }
 0x5eb   :  { %3742 = vmatprep.subr.mxu0 %v4232_v2 }
 0x5ec   :  { %3743 = vmatpush3.msra.mxu0 %v4618_v26 }
 0x5ed   :  { %3744 = vmatprep.subr.mxu0 %v4232_v2 }
 0x5ee   :  { %3745 = vmatpush3.msra.mxu0 %v4625_v27 }
 0x5ef   :  { %3746 = vmatprep.subr.mxu0 %v4232_v2 }
 0x5f0   :  { %3747 = vmatpush3.msra.mxu0 %v4632_v28 }
 0x5f1   :  { %3748 = vmatprep.subr.mxu0 %v4232_v2 }
 0x5f2   :  { %3749 = vmatpush3.msra.mxu0 %v4639_v29 }
 0x5f3   :  { %3750 = vmatprep.subr.mxu0 %v4232_v2 }
 0x5f4   :  { %3751 = vmatpush3.msra.mxu0 %v4646_v30 }
 0x5f5   :  { %3774 = vmatprep.subr.mxu0 %v4232_v2 }
 0x695   :  { %v826_v51 = vpop.f32.mrf.mxu0 }
 0x696   :  { %v830_v52 = vadd.f32 %v826_v51, %v756_v50 }
 0x697   :  { %v3669_v53 = vpop.f32.mrf.mxu0 }
 0x698   :  { %4198 = vtanh.f32 %v830_v52  ;;  %v4907_v53 = vld [vmem:[%s5362_s9] ss:$0 sm:$0xff] }
 0x6a5   :  { %v4199_v54 = vpop.eup %4198  ;;  %v1068_v56 = vpop.f32.mrf.mxu0 }
 0x6a6   :  { %832 = vst.msk [vmem:[#allocation2 + $0x38] sm:$0xff] %vm72_vm1, %v4199_v54  ;;  %v1072_v57 = vadd.f32 %v1068_v56, %v1001_v55 }
 0x6a7   :  { %v3716_v58 = vpop.f32.mrf.mxu0 }
 0x6a8   :  { %4200 = vtanh.f32 %v1072_v57 }
 0x6ad   :  { %v840_v59 = vld [vmem:[#allocation2 + $0x38] sm:$0xff] }
 0x6ae   :  { %3696 = vmatmul.mubr.msk.f32.gmra.mxu1 %vm72_vm1, %v840_v59 }
 0x6af   :  { %3733 = vmatprep.mubr.msk.f32.mxu1 %vm4233_vm0, %v4232_v2 }
 0x6b5   :  { %v4201_v60 = vpop.eup %4200 }
 0x6b6   :  { %1074 = vst.msk [vmem:[#allocation2] sm:$0xff] %vm72_vm1, %v4201_v60  ;;  %3734 = vmatmul.mubr.msk.f32.vlgmr.msra.gmra.mxu1 %vm72_vm1, %v4201_v60 }
 0x6b7   :  { %3756 = vmatpush3.msra.mxu1 %v4598_v23  ;;  %3771 = vmatprep.mubr.msk.f32.mxu1 %vm4233_vm0, %v4232_v2 }
 0x6b8   :  { %3757 = vmatprep.subr.mxu1 %v4232_v2 }
 0x6b9   :  { %3758 = vmatpush3.msra.mxu1 %v4604_v24 }
 0x6ba   :  { %3759 = vmatprep.subr.mxu1 %v4232_v2 }
 0x6bb   :  { %3760 = vmatpush3.msra.mxu1 %v4611_v25 }
 0x6bc   :  { %3761 = vmatprep.subr.mxu1 %v4232_v2 }
 0x6bd   :  { %3762 = vmatpush3.msra.mxu1 %v4618_v26 }
 0x6be   :  { %3763 = vmatprep.subr.mxu1 %v4232_v2 }
 0x6bf   :  { %3764 = vmatpush3.msra.mxu1 %v4625_v27 }
 0x6c0   :  { %3765 = vmatprep.subr.mxu1 %v4232_v2 }
 0x6c1   :  { %3766 = vmatpush3.msra.mxu1 %v4632_v28 }
 0x6c2   :  { %3767 = vmatprep.subr.mxu1 %v4232_v2 }
 0x6c3   :  { %3768 = vmatpush3.msra.mxu1 %v4639_v29 }
 0x6c4   :  { %3769 = vmatprep.subr.mxu1 %v4232_v2 }
 0x6c5   :  { %3770 = vmatpush3.msra.mxu1 %v4646_v30 }
 0x6c6   :  { %3793 = vmatprep.subr.mxu1 %v4232_v2 }
 0x76e   :  { %v3697_v61 = vpop.f32.mrf.mxu1 }
 0x76f   :  { %v990_v62 = vadd.f32 %v3697_v61, %v4654_v35 }
 0x770   :  { %v984_v63 = vpop.f32.mrf.mxu1 }
 0x771   :  { %1000 = vst.msk [vmem:[#allocation2 + $0x38] sm:$0xff] %vm72_vm1, %v990_v62  ;;  %v985_v0 = vadd.f32 %v4654_v35, %v984_v63  ;;  %v1622_v35 = vld [vmem:[%s5360_s7] sm:$0xff] }
 0x773   :  { %999 = vst.msk [vmem:[#allocation2 + $0x30] sm:$0xff] %vm72_vm1, %v985_v0 }
 0x776   :  { %v1145_v3 = vpop.f32.mrf.mxu1 }
 0x777   :  { %v1149_v4 = vadd.f32 %v1145_v3, %v1075_v1 }
 0x778   :  { %v3735_v5 = vpop.f32.mrf.mxu1 }
 0x779   :  { %4202 = vtanh.f32 %v1149_v4  ;;  %v1537_v5 = vld [vmem:[#allocation2 + $0x38] sm:$0xff] }
 0x77a   :  { %v1460_v49 = vld [vmem:[#allocation2 + $0x30] sm:$0xff] }
 0x786   :  { %v4203_v6 = vpop.eup %4202 }
 0x787   :  { %1151 = vst.msk [vmem:[#allocation2 + $0x8] sm:$0xff] %vm72_vm1, %v4203_v6  ;;  %3753 = vmatmul.mubr.msk.f32.vlgmr.msra.gmra.mxu0 %vm72_vm1, %v4203_v6 }
 0x788   :  { %3775 = vmatpush3.msra.mxu0 %v4598_v23  ;;  %3790 = vmatprep.mubr.msk.f32.mxu0 %vm4233_vm0, %v4232_v2 }
 0x789   :  { %3776 = vmatprep.subr.mxu0 %v4232_v2 }
 0x78a   :  { %3777 = vmatpush3.msra.mxu0 %v4604_v24 }
 0x78b   :  { %3778 = vmatprep.subr.mxu0 %v4232_v2 }
 0x78c   :  { %3779 = vmatpush3.msra.mxu0 %v4611_v25 }
 0x78d   :  { %3780 = vmatprep.subr.mxu0 %v4232_v2 }
 0x78e   :  { %3781 = vmatpush3.msra.mxu0 %v4618_v26  ;;  %v1615_v36 = vld [vmem:[#allocation2 + $0x8] sm:$0xff] }
 0x78f   :  { %3782 = vmatprep.subr.mxu0 %v4232_v2 }
 0x790   :  { %3783 = vmatpush3.msra.mxu0 %v4625_v27 }
 0x791   :  { %3784 = vmatprep.subr.mxu0 %v4232_v2 }
 0x792   :  { %3785 = vmatpush3.msra.mxu0 %v4632_v28 }
 0x793   :  { %3786 = vmatprep.subr.mxu0 %v4232_v2 }
 0x794   :  { %3787 = vmatpush3.msra.mxu0 %v4639_v29 }
 0x795   :  { %3788 = vmatprep.subr.mxu0 %v4232_v2 }
 0x796   :  { %3789 = vmatpush3.msra.mxu0 %v4646_v30 }
 0x797   :  { %3812 = vmatprep.subr.mxu0 %v4232_v2 }
 0x847   :  { %v1222_v8 = vpop.f32.mrf.mxu0 }
 0x848   :  { %v1226_v9 = vadd.f32 %v1222_v8, %v1152_v7 }
 0x849   :  { %v3754_v10 = vpop.f32.mrf.mxu0 }
 0x84a   :  { %4204 = vtanh.f32 %v1226_v9 }
 0x857   :  { %v4205_v11 = vpop.eup %4204 }
 0x858   :  { %1228 = vst.msk [vmem:[#allocation2 + $0x10] sm:$0xff] %vm72_vm1, %v4205_v11  ;;  %3772 = vmatmul.mubr.msk.f32.vlgmr.msra.gmra.mxu1 %vm72_vm1, %v4205_v11 }
 0x859   :  { %3794 = vmatpush3.msra.mxu1 %v4598_v23  ;;  %3809 = vmatprep.mubr.msk.f32.mxu1 %vm4233_vm0, %v4232_v2 }
 0x85a   :  { %3795 = vmatprep.subr.mxu1 %v4232_v2 }
 0x85b   :  { %3796 = vmatpush3.msra.mxu1 %v4604_v24 }
 0x85c   :  { %3797 = vmatprep.subr.mxu1 %v4232_v2 }
 0x85d   :  { %3798 = vmatpush3.msra.mxu1 %v4611_v25 }
 0x85e   :  { %3799 = vmatprep.subr.mxu1 %v4232_v2 }
 0x85f   :  { %3800 = vmatpush3.msra.mxu1 %v4618_v26  ;;  %v1616_v37 = vld [vmem:[#allocation2 + $0x10] sm:$0xff] }
 0x860   :  { %3801 = vmatprep.subr.mxu1 %v4232_v2 }
 0x861   :  { %3802 = vmatpush3.msra.mxu1 %v4625_v27 }
 0x862   :  { %3803 = vmatprep.subr.mxu1 %v4232_v2 }
 0x863   :  { %3804 = vmatpush3.msra.mxu1 %v4632_v28 }
 0x864   :  { %3805 = vmatprep.subr.mxu1 %v4232_v2 }
 0x865   :  { %3806 = vmatpush3.msra.mxu1 %v4639_v29 }
 0x866   :  { %3807 = vmatprep.subr.mxu1 %v4232_v2 }
 0x867   :  { %3808 = vmatpush3.msra.mxu1 %v4646_v30 }
 0x868   :  { %3831 = vmatprep.subr.mxu1 %v4232_v2 }
 0x918   :  { %v1299_v13 = vpop.f32.mrf.mxu1 }
 0x919   :  { %v1303_v14 = vadd.f32 %v1299_v13, %v1229_v12 }
 0x91a   :  { %v3773_v15 = vpop.f32.mrf.mxu1 }
 0x91b   :  { %4206 = vtanh.f32 %v1303_v14  ;;  %v1862_v15 = vld [vmem:[%s5363_s10 + $0x38] sm:$0xff] }
 0x928   :  { %v4207_v16 = vpop.eup %4206 }
 0x929   :  { %1305 = vst.msk [vmem:[#allocation2 + $0x18] sm:$0xff] %vm72_vm1, %v4207_v16  ;;  %3791 = vmatmul.mubr.msk.f32.vlgmr.msra.gmra.mxu0 %vm72_vm1, %v4207_v16 }
 0x92a   :  { %3813 = vmatpush3.msra.mxu0 %v4598_v23  ;;  %3828 = vmatprep.mubr.msk.f32.mxu0 %vm4233_vm0, %v4232_v2 }
 0x92b   :  { %3814 = vmatprep.subr.mxu0 %v4232_v2 }
 0x92c   :  { %3815 = vmatpush3.msra.mxu0 %v4604_v24 }
 0x92d   :  { %3816 = vmatprep.subr.mxu0 %v4232_v2 }
 0x92e   :  { %3817 = vmatpush3.msra.mxu0 %v4611_v25 }
 0x92f   :  { %3818 = vmatprep.subr.mxu0 %v4232_v2 }
 0x930   :  { %3819 = vmatpush3.msra.mxu0 %v4618_v26  ;;  %v1617_v38 = vld [vmem:[#allocation2 + $0x18] sm:$0xff] }
 0x931   :  { %3820 = vmatprep.subr.mxu0 %v4232_v2 }
 0x932   :  { %3821 = vmatpush3.msra.mxu0 %v4625_v27 }
 0x933   :  { %3822 = vmatprep.subr.mxu0 %v4232_v2 }
 0x934   :  { %3823 = vmatpush3.msra.mxu0 %v4632_v28 }
 0x935   :  { %3824 = vmatprep.subr.mxu0 %v4232_v2 }
 0x936   :  { %3825 = vmatpush3.msra.mxu0 %v4639_v29 }
 0x937   :  { %3826 = vmatprep.subr.mxu0 %v4232_v2 }
 0x938   :  { %3827 = vmatpush3.msra.mxu0 %v4646_v30 }
 0x939   :  { %3850 = vmatprep.subr.mxu0 %v1629_v22 }
 0x9e9   :  { %v1376_v18 = vpop.f32.mrf.mxu0 }
 0x9ea   :  { %v1380_v19 = vadd.f32 %v1376_v18, %v1306_v17  ;;  %v1861_v17 = vld [vmem:[%s5363_s10 + $0x30] sm:$0xff]  ;;  %v1860_v18 = vld [vmem:[%s5363_s10 + $0x28] sm:$0xff] }
 0x9eb   :  { %v3792_v20 = vpop.f32.mrf.mxu0 }
 0x9ec   :  { %4208 = vtanh.f32 %v1380_v19  ;;  %v1859_v19 = vld [vmem:[%s5363_s10 + $0x20] sm:$0xff]  ;;  %v1858_v20 = vld [vmem:[%s5363_s10 + $0x18] sm:$0xff] }
 0x9f9   :  { %v4209_v21 = vpop.eup %4208 }
 0x9fa   :  { %1382 = vst.msk [vmem:[#allocation2 + $0x20] sm:$0xff] %vm72_vm1, %v4209_v21  ;;  %3810 = vmatmul.mubr.msk.f32.vlgmr.msra.gmra.mxu1 %vm72_vm1, %v4209_v21  ;;  %v1857_v21 = vld [vmem:[%s5363_s10 + $0x10] sm:$0xff] }
 0x9fb   :  { %3832 = vmatpush3.msra.mxu1 %v4598_v23  ;;  %3847 = vmatprep.mubr.msk.f32.mxu1 %vm4233_vm0, %v4232_v2  ;;  %v1383_v23 = vld [vmem:[#allocation2 + $0x28] sm:$0xff] }
 0x9fc   :  { %3833 = vmatprep.subr.mxu1 %v4232_v2 }
 0x9fd   :  { %3834 = vmatpush3.msra.mxu1 %v4604_v24 }
 0x9fe   :  { %3835 = vmatprep.subr.mxu1 %v4232_v2 }
 0x9ff   :  { %3836 = vmatpush3.msra.mxu1 %v4611_v25 }
 0xa00   :  { %3837 = vmatprep.subr.mxu1 %v4232_v2 }
 0xa01   :  { %3838 = vmatpush3.msra.mxu1 %v4618_v26  ;;  %v1618_v39 = vld [vmem:[#allocation2 + $0x20] sm:$0xff] }
 0xa02   :  { %3839 = vmatprep.subr.mxu1 %v4232_v2 }
 0xa03   :  { %3840 = vmatpush3.msra.mxu1 %v4625_v27 }
 0xa04   :  { %3841 = vmatprep.subr.mxu1 %v4232_v2 }
 0xa05   :  { %3842 = vmatpush3.msra.mxu1 %v4632_v28  ;;  %v1628_v28 = vld [vmem:[%s5360_s7 + $0x30] sm:$0xff] }
 0xa06   :  { %3843 = vmatprep.subr.mxu1 %v4232_v2 }
 0xa07   :  { %3844 = vmatpush3.msra.mxu1 %v4639_v29  ;;  %v1614_v29 = vld [vmem:[#allocation2] sm:$0xff] }
 0xa08   :  { %3845 = vmatprep.subr.mxu1 %v4232_v2 }
 0xa09   :  { %3846 = vmatpush3.msra.mxu1 %v4646_v30  ;;  %v1627_v30 = vld [vmem:[%s5360_s7 + $0x28] sm:$0xff] }
 0xa0a   :  { %3878 = vmatprep.subr.mxu1 %v4232_v2 }
 0xaba   :  { %v1453_v24 = vpop.f32.mrf.mxu1 }
 0xabb   :  { %v1457_v25 = vadd.f32 %v1453_v24, %v1383_v23  ;;  %v1855_v23 = vld [vmem:[%s5363_s10] sm:$0xff]  ;;  %v3090_v24 = vld [vmem:[%s5363_s10 + $0x78] sm:$0xff] }
 0xabc   :  { %v3811_v26 = vpop.f32.mrf.mxu1 }
 0xabd   :  { %4210 = vtanh.f32 %v1457_v25  ;;  %v3089_v25 = vld [vmem:[%s5363_s10 + $0x70] sm:$0xff]  ;;  %v3088_v26 = vld [vmem:[%s5363_s10 + $0x68] sm:$0xff] }
 0xaca   :  { %v4211_v27 = vpop.eup %4210 }
 0xacb   :  { %1459 = vst.msk [vmem:[#allocation2 + $0x28] sm:$0xff] %vm72_vm1, %v4211_v27  ;;  %3829 = vmatmul.mubr.msk.f32.vlgmr.msra.gmra.mxu0 %vm72_vm1, %v4211_v27  ;;  %v3087_v27 = vld [vmem:[%s5363_s10 + $0x60] sm:$0xff] }
 0xacc   :  { %3851 = vmatpush3.msra.mxu0 %v1629_v22  ;;  %3866 = vmatprep.mubr.msk.f32.mxu0 %vm72_vm1, %v1614_v29  ;;  %v1856_v22 = vld [vmem:[%s5363_s10 + $0x8] sm:$0xff]  ;;  %v3085_v29 = vld [vmem:[%s5363_s10 + $0x50] sm:$0xff] }
 0xacd   :  { %3852 = vmatprep.subr.mxu0 %v1628_v28 }
 0xace   :  { %3853 = vmatpush3.msra.mxu0 %v1628_v28  ;;  %v3086_v28 = vld [vmem:[%s5363_s10 + $0x58] sm:$0xff] }
 0xacf   :  { %3854 = vmatprep.subr.mxu0 %v1627_v30 }
 0xad0   :  { %3855 = vmatpush3.msra.mxu0 %v1627_v30  ;;  %v3084_v30 = vld [vmem:[%s5363_s10 + $0x48] sm:$0xff] }
 0xad1   :  { %3856 = vmatprep.subr.mxu0 %v1626_v31 }
 0xad2   :  { %3857 = vmatpush3.msra.mxu0 %v1626_v31  ;;  %v1619_v40 = vld [vmem:[#allocation2 + $0x28] sm:$0xff]  ;;  %v3083_v31 = vld [vmem:[%s5363_s10 + $0x40] sm:$0xff] }
 0xad3   :  { %3858 = vmatprep.subr.mxu0 %v1625_v32 }
 0xad4   :  { %3859 = vmatpush3.msra.mxu0 %v1625_v32 }
 0xad5   :  { %3860 = vmatprep.subr.mxu0 %v1624_v33 }
 0xad6   :  { %3861 = vmatpush3.msra.mxu0 %v1624_v33 }
 0xad7   :  { %3862 = vmatprep.subr.mxu0 %v1623_v34 }
 0xad8   :  { %3863 = vmatpush3.msra.mxu0 %v1623_v34 }
 0xad9   :  { %3864 = vmatprep.subr.mxu0 %v1622_v35 }
 0xada   :  { %3865 = vmatpush3.msra.mxu0 %v1622_v35 }
 0xadb   :  { %3867 = vmatmul.mubr.msk.f32.vlgmr.msra.gmra.mxu0 %vm72_vm1, %v1615_v36  ;;  %3897 = vmatprep.subr.mxu0 %v4232_v2 }
 0xadc   :  { %3869 = vmatprep.mubr.msk.f32.mxu0 %vm72_vm1, %v1616_v37  ;;  %3898 = vmatpush3.msra.mxu0 %v4851_v41 }
 0xadd   :  { %3899 = vmatprep.subr.mxu0 %v4232_v2 }
 0xade   :  { %3900 = vmatpush3.msra.mxu0 %v4857_v42 }
 0xadf   :  { %3870 = vmatmul.mubr.msk.f32.gmra.mxu0 %vm72_vm1, %v1617_v38  ;;  %3901 = vmatprep.subr.mxu0 %v4232_v2 }
 0xae0   :  { %3872 = vmatprep.mubr.msk.f32.mxu0 %vm72_vm1, %v1618_v39  ;;  %3902 = vmatpush3.msra.mxu0 %v4864_v43 }
 0xae1   :  { %3903 = vmatprep.subr.mxu0 %v4232_v2 }
 0xae2   :  { %3904 = vmatpush3.msra.mxu0 %v4871_v44 }
 0xae3   :  { %3873 = vmatmul.mubr.msk.f32.gmra.mxu0 %vm72_vm1, %v1619_v40  ;;  %3905 = vmatprep.subr.mxu0 %v4232_v2 }
 0xae4   :  { %3906 = vmatpush3.msra.mxu0 %v4878_v45 }
 0xae5   :  { %3907 = vmatprep.subr.mxu0 %v4232_v2 }
 0xae6   :  { %3908 = vmatpush3.msra.mxu0 %v4885_v46 }
 0xae7   :  { %3909 = vmatprep.subr.mxu0 %v4232_v2 }
 0xae8   :  { %3910 = vmatpush3.msra.mxu0 %v4892_v47 }
 0xae9   :  { %3911 = vmatprep.subr.mxu0 %v4232_v2 }
 0xaea   :  { %3912 = vmatpush3.msra.mxu0 %v4899_v48 }
 0xaeb   :  { %3935 = vmatprep.subr.mxu0 %v4232_v2 }
 0xb8b   :  { %v1530_v50 = vpop.f32.mrf.mxu0 }
 0xb8c   :  { %v1534_v51 = vadd.f32 %v1530_v50, %v1460_v49 }
 0xb8d   :  { %v3830_v52 = vpop.f32.mrf.mxu0 }
 0xb8e   :  { %4212 = vtanh.f32 %v1534_v51  ;;  %v3101_v51 = vld [vmem:[%s5363_s10 + $0xb8] sm:$0xff]  ;;  %v3100_v52 = vld [vmem:[%s5363_s10 + $0xb0] sm:$0xff] }
 0xb9b   :  { %v4213_v54 = vpop.eup %4212  ;;  %v3868_v55 = vpop.f32.mrf.mxu0 }
 0xb9c   :  { %1536 = vst.msk [vmem:[#allocation2 + $0x30] sm:$0xff] %vm72_vm1, %v4213_v54  ;;  %v1741_v56 = vadd.f32 %v3868_v55, %v4907_v53  ;;  %3848 = vmatmul.mubr.msk.f32.vlgmr.msra.gmra.mxu1 %vm72_vm1, %v4213_v54  ;;  %v3098_v54 = vld [vmem:[%s5363_s10 + $0xa0] sm:$0xff]  ;;  %v3097_v55 = vld [vmem:[%s5363_s10 + $0x98] sm:$0xff] }
 0xb9d   :  { %v1735_v57 = vpop.f32.mrf.mxu0  ;;  %3879 = vmatpush3.msra.mxu1 %v4851_v41  ;;  %3894 = vmatprep.mubr.msk.f32.mxu1 %vm4233_vm0, %v4232_v2 }
 0xb9e   :  { %1775 = vst.msk [vmem:[#allocation2 + $0x8] sm:$0xff] %vm72_vm1, %v1741_v56  ;;  %v1736_v58 = vadd.f32 %v4907_v53, %v1735_v57  ;;  %3880 = vmatprep.subr.mxu1 %v4232_v2  ;;  %v3096_v56 = vld [vmem:[%s5363_s10 + $0x90] sm:$0xff]  ;;  %v3095_v57 = vld [vmem:[%s5363_s10 + $0x88] sm:$0xff] }
 0xb9f   :  { %v3871_v59 = vpop.f32.mrf.mxu0  ;;  %3881 = vmatpush3.msra.mxu1 %v4857_v42 }
 0xba0   :  { %1774 = vst.msk [vmem:[#allocation2] sm:$0xff] %vm72_vm1, %v1736_v58  ;;  %v1751_v60 = vadd.f32 %v3871_v59, %v4907_v53  ;;  %3882 = vmatprep.subr.mxu1 %v4232_v2  ;;  %v3094_v58 = vld [vmem:[%s5363_s10 + $0x80] sm:$0xff] }
 0xba1   :  { %v1745_v61 = vpop.f32.mrf.mxu0  ;;  %3883 = vmatpush3.msra.mxu1 %v4864_v43 }
 0xba2   :  { %1777 = vst.msk [vmem:[#allocation2 + $0x18] sm:$0xff] %vm72_vm1, %v1751_v60  ;;  %v1746_v62 = vadd.f32 %v4907_v53, %v1745_v61  ;;  %3884 = vmatprep.subr.mxu1 %v4232_v2 }
 0xba3   :  { %v3874_v63 = vpop.f32.mrf.mxu0  ;;  %3885 = vmatpush3.msra.mxu1 %v4871_v44  ;;  %v1620_v0 = vld [vmem:[#allocation2 + $0x30] sm:$0xff] }
 0xba4   :  { %1776 = vst.msk [vmem:[#allocation2 + $0x10] sm:$0xff] %vm72_vm1, %v1746_v62  ;;  %v1761_v1 = vadd.f32 %v3874_v63, %v4907_v53  ;;  %3886 = vmatprep.subr.mxu1 %v4232_v2  ;;  %3875 = vmatprep.mubr.msk.f32.mxu0 %vm72_vm1, %v1620_v0 }
 0xba5   :  { %v1755_v3 = vpop.f32.mrf.mxu0  ;;  %3887 = vmatpush3.msra.mxu1 %v4878_v45  ;;  %v1863_v36 = vld [vmem:[#allocation2 + $0x8] sm:$0xff] }
 0xba6   :  { %1779 = vst.msk [vmem:[#allocation2 + $0x28] sm:$0xff] %vm72_vm1, %v1761_v1  ;;  %v1756_v4 = vadd.f32 %v4907_v53, %v1755_v3  ;;  %3888 = vmatprep.subr.mxu1 %v4232_v2  ;;  %v3111_v3 = vld [vmem:[%s5363_s10 + $0xf8] sm:$0xff] }
 0xba7   :  { %3889 = vmatpush3.msra.mxu1 %v4885_v46  ;;  %v1782_v10 = vld [vmem:[#allocation2] sm:$0xff] }
 0xba8   :  { %1778 = vst.msk [vmem:[#allocation2 + $0x20] sm:$0xff] %vm72_vm1, %v1756_v4  ;;  %3890 = vmatprep.subr.mxu1 %v4232_v2  ;;  %v3110_v4 = vld [vmem:[%s5363_s10 + $0xf0] sm:$0xff] }
 0xba9   :  { %3891 = vmatpush3.msra.mxu1 %v4892_v47 }
 0xbaa   :  { %3892 = vmatprep.subr.mxu1 %v4232_v2 }
 0xbab   :  { %3893 = vmatpush3.msra.mxu1 %v4899_v48  ;;  %v2091_v61 = vld [vmem:[#allocation2 + $0x10] sm:$0xff] }
 0xbac   :  { %3895 = vmatmul.mubr.f32.vlgmr.msra.gmra.mxu1 %v4232_v2  ;;  %3916 = vmatprep.subr.mxu1 %v4232_v2 }
 0xbad   :  { %3932 = vmatprep.mubr.msk.f32.mxu1 %vm4233_vm0, %v4232_v2  ;;  %3917 = vmatpush3.msra.mxu1 %v3090_v24  ;;  %v3117_v24 = vld [vmem:[%s5363_s10 + $0x118] sm:$0xff] }
 0xbae   :  { %3918 = vmatprep.subr.mxu1 %v4232_v2 }
 0xbaf   :  { %3919 = vmatpush3.msra.mxu1 %v3089_v25  ;;  %v3116_v25 = vld [vmem:[%s5363_s10 + $0x110] sm:$0xff] }
 0xbb0   :  { %3920 = vmatprep.subr.mxu1 %v4232_v2 }
 0xbb1   :  { %3921 = vmatpush3.msra.mxu1 %v3088_v26  ;;  %v3115_v26 = vld [vmem:[%s5363_s10 + $0x108] sm:$0xff] }
 0xbb2   :  { %3922 = vmatprep.subr.mxu1 %v4232_v2 }
 0xbb3   :  { %3923 = vmatpush3.msra.mxu1 %v3087_v27  ;;  %v3114_v27 = vld [vmem:[%s5363_s10 + $0x100] sm:$0xff] }
 0xbb4   :  { %3924 = vmatprep.subr.mxu1 %v4232_v2 }
 0xbb5   :  { %3925 = vmatpush3.msra.mxu1 %v3086_v28 }
 0xbb6   :  { %3926 = vmatprep.subr.mxu1 %v4232_v2 }
 0xbb7   :  { %3927 = vmatpush3.msra.mxu1 %v3085_v29  ;;  %v2403_v29 = vld [vmem:[#allocation2 + $0x20] sm:$0xff] }
 0xbb8   :  { %3928 = vmatprep.subr.mxu1 %v4232_v2 }
 0xbb9   :  { %3929 = vmatpush3.msra.mxu1 %v3084_v30 }
 0xbba   :  { %3930 = vmatprep.subr.mxu1 %v4232_v2 }
 0xbbb   :  { %3931 = vmatpush3.msra.mxu1 %v3083_v31 }
 0xbbc   :  { %3954 = vmatprep.subr.mxu1 %v4232_v2 }
 0xc5c   :  { %v1607_v6 = vpop.f32.mrf.mxu1 }
 0xc5d   :  { %v1611_v7 = vadd.f32 %v1607_v6, %v1537_v5  ;;  %v3109_v5 = vld [vmem:[%s5363_s10 + $0xe8] sm:$0xff]  ;;  %v3108_v6 = vld [vmem:[%s5363_s10 + $0xe0] sm:$0xff] }
 0xc5e   :  { %v3849_v8 = vpop.f32.mrf.mxu1 }
 0xc5f   :  { %4214 = vtanh.f32 %v1611_v7  ;;  %v3107_v7 = vld [vmem:[%s5363_s10 + $0xd8] sm:$0xff]  ;;  %v3106_v8 = vld [vmem:[%s5363_s10 + $0xd0] sm:$0xff] }
 0xc6c   :  { %v4215_v9 = vpop.eup %4214  ;;  %v1849_v11 = vpop.f32.mrf.mxu1 }
 0xc6d   :  { %1613 = vst.msk [vmem:[#allocation2 + $0x38] sm:$0xff] %vm72_vm1, %v4215_v9  ;;  %v1853_v12 = vadd.f32 %v1849_v11, %v1782_v10  ;;  %v3105_v9 = vld [vmem:[%s5363_s10 + $0xc8] sm:$0xff]  ;;  %v3104_v10 = vld [vmem:[%s5363_s10 + $0xc0] sm:$0xff] }
 0xc6e   :  { %v3896_v13 = vpop.f32.mrf.mxu1 }
 0xc6f   :  { %4216 = vtanh.f32 %v1853_v12  ;;  %v2247_v13 = vld [vmem:[#allocation2 + $0x18] sm:$0xff] }
 0xc74   :  { %v1621_v14 = vld [vmem:[#allocation2 + $0x38] sm:$0xff] }
 0xc75   :  { %3876 = vmatmul.mubr.msk.f32.gmra.mxu0 %vm72_vm1, %v1621_v14 }
 0xc76   :  { %3913 = vmatprep.mubr.msk.f32.mxu0 %vm4233_vm0, %v4232_v2 }
 0xc7c   :  { %v4217_v16 = vpop.eup %4216 }
 0xc7d   :  { %3914 = vmatmul.mubr.msk.f32.vlgmr.msra.gmra.mxu0 %vm72_vm1, %v4217_v16 }
 0xc7e   :  { %3936 = vmatpush3.msra.mxu0 %v1862_v15  ;;  %3951 = vmatprep.mubr.msk.f32.mxu0 %vm4233_vm0, %v4232_v2 }
 0xc7f   :  { %3937 = vmatprep.subr.mxu0 %v4232_v2 }
 0xc80   :  { %3938 = vmatpush3.msra.mxu0 %v1861_v17 }
 0xc81   :  { %3939 = vmatprep.subr.mxu0 %v4232_v2 }
 0xc82   :  { %3940 = vmatpush3.msra.mxu0 %v1860_v18 }
 0xc83   :  { %3941 = vmatprep.subr.mxu0 %v4232_v2 }
 0xc84   :  { %3942 = vmatpush3.msra.mxu0 %v1859_v19 }
 0xc85   :  { %3943 = vmatprep.subr.mxu0 %v4232_v2 }
 0xc86   :  { %3944 = vmatpush3.msra.mxu0 %v1858_v20  ;;  %v3121_v20 = vld [vmem:[%s5363_s10 + $0x138] sm:$0xff] }
 0xc87   :  { %3945 = vmatprep.subr.mxu0 %v4232_v2 }
 0xc88   :  { %3946 = vmatpush3.msra.mxu0 %v1857_v21  ;;  %v3120_v21 = vld [vmem:[%s5363_s10 + $0x130] sm:$0xff] }
 0xc89   :  { %3947 = vmatprep.subr.mxu0 %v4232_v2 }
 0xc8a   :  { %3948 = vmatpush3.msra.mxu0 %v1856_v22  ;;  %v3119_v22 = vld [vmem:[%s5363_s10 + $0x128] sm:$0xff] }
 0xc8b   :  { %3949 = vmatprep.subr.mxu0 %v4232_v2 }
 0xc8c   :  { %3950 = vmatpush3.msra.mxu0 %v1855_v23  ;;  %v3118_v23 = vld [vmem:[%s5363_s10 + $0x120] sm:$0xff] }
 0xc8d   :  { %3952 = vmatmul.mubr.msk.f32.vlgmr.msra.gmra.mxu0 %vm72_vm1, %v4217_v16  ;;  %3973 = vmatprep.subr.mxu0 %v4232_v2 }
 0xc8e   :  { %3989 = vmatprep.mubr.msk.f32.mxu0 %vm4233_vm0, %v4232_v2  ;;  %3974 = vmatpush3.msra.mxu0 %v3101_v51  ;;  %v3124_v51 = vld [vmem:[%s5363_s10 + $0x140] sm:$0xff] }
 0xc8f   :  { %3975 = vmatprep.subr.mxu0 %v4232_v2 }
 0xc90   :  { %3976 = vmatpush3.msra.mxu0 %v3100_v52 }
 0xc91   :  { %3977 = vmatprep.subr.mxu0 %v4232_v2 }
 0xd35   :  { %v3877_v32 = vpop.f32.mrf.mxu0 }
 0xd36   :  { %v1771_v33 = vadd.f32 %v3877_v32, %v4907_v53 }
 0xd37   :  { %v1765_v34 = vpop.f32.mrf.mxu0 }
 0xd38   :  { %1781 = vst.msk [vmem:[#allocation2 + $0x38] sm:$0xff] %vm72_vm1, %v1771_v33  ;;  %v1766_v35 = vadd.f32 %v4907_v53, %v1765_v34  ;;  %v3099_v53 = vld [vmem:[%s5363_s10 + $0xa8] sm:$0xff] }
 0xd39   :  { %3978 = vmatpush3.msra.mxu0 %v3099_v53  ;;  %v2559_v53 = vld [vmem:[#allocation2 + $0x28] sm:$0xff] }
 0xd3a   :  { %1780 = vst.msk [vmem:[#allocation2 + $0x30] sm:$0xff] %vm72_vm1, %v1766_v35  ;;  %3979 = vmatprep.subr.mxu0 %v4232_v2 }
 0xd3b   :  { %3980 = vmatpush3.msra.mxu0 %v3098_v54 }
 0xd3c   :  { %3981 = vmatprep.subr.mxu0 %v4232_v2 }
 0xd3d   :  { %v1933_v37 = vpop.f32.mrf.mxu0  ;;  %3982 = vmatpush3.msra.mxu0 %v3097_v55 }
 0xd3e   :  { %v1937_v38 = vadd.f32 %v1933_v37, %v1863_v36  ;;  %3983 = vmatprep.subr.mxu0 %v4232_v2  ;;  %v3131_v36 = vld [vmem:[%s5363_s10 + $0x178] sm:$0xff]  ;;  %v3130_v37 = vld [vmem:[%s5363_s10 + $0x170] sm:$0xff] }
 0xd3f   :  { %v3915_v39 = vpop.f32.mrf.mxu0  ;;  %3984 = vmatpush3.msra.mxu0 %v3096_v56 }
 0xd40   :  { %4218 = vtanh.f32 %v1937_v38  ;;  %3985 = vmatprep.subr.mxu0 %v4232_v2  ;;  %v3129_v38 = vld [vmem:[%s5363_s10 + $0x168] sm:$0xff]  ;;  %v3128_v39 = vld [vmem:[%s5363_s10 + $0x160] sm:$0xff] }
 0xd41   :  { %3986 = vmatpush3.msra.mxu0 %v3095_v57 }
 0xd42   :  { %3987 = vmatprep.subr.mxu0 %v4232_v2 }
 0xd43   :  { %3988 = vmatpush3.msra.mxu0 %v3094_v58 }
 0xd44   :  { %4011 = vmatprep.subr.mxu0 %v4232_v2 }
 0xd4d   :  { %v4219_v40 = vpop.eup %4218  ;;  %v5023_v49 = vpop.f32.mrf.mxu0 }
 0xd4e   :  { %3933 = vmatmul.mubr.msk.f32.vlgmr.msra.gmra.mxu1 %vm72_vm1, %v4219_v40 }
 0xd4f   :  { %v3953_v50 = vpop.f32.mrf.mxu0  ;;  %3955 = vmatpush3.msra.mxu1 %v4851_v41  ;;  %3970 = vmatprep.mubr.msk.f32.mxu1 %vm4233_vm0, %v4232_v2 }
 0xd50   :  { %3956 = vmatprep.subr.mxu1 %v4232_v2  ;;  %v3125_v50 = vld [vmem:[%s5363_s10 + $0x148] sm:$0xff] }
 0xd51   :  { %3957 = vmatpush3.msra.mxu1 %v4857_v42 }
 0xd52   :  { %3958 = vmatprep.subr.mxu1 %v4232_v2 }
 0xd53   :  { %3959 = vmatpush3.msra.mxu1 %v4864_v43 }
 0xd54   :  { %3960 = vmatprep.subr.mxu1 %v4232_v2 }
 0xd55   :  { %3961 = vmatpush3.msra.mxu1 %v4871_v44 }
 0xd56   :  { %3962 = vmatprep.subr.mxu1 %v4232_v2 }
 0xd57   :  { %3963 = vmatpush3.msra.mxu1 %v4878_v45 }
 0xd58   :  { %3964 = vmatprep.subr.mxu1 %v4232_v2 }
 0xd59   :  { %3965 = vmatpush3.msra.mxu1 %v4885_v46 }
 0xd5a   :  { %3966 = vmatprep.subr.mxu1 %v4232_v2 }
 0xd5b   :  { %3967 = vmatpush3.msra.mxu1 %v4892_v47 }
 0xd5c   :  { %3968 = vmatprep.subr.mxu1 %v4232_v2 }
 0xd5d   :  { %3969 = vmatpush3.msra.mxu1 %v4899_v48 }
 0xd5e   :  { %3971 = vmatmul.mubr.msk.f32.vlgmr.msra.gmra.mxu1 %vm72_vm1, %v4219_v40  ;;  %3992 = vmatprep.subr.mxu1 %v4232_v2  ;;  %v3127_v40 = vld [vmem:[%s5363_s10 + $0x158] sm:$0xff] }
 0xd5f   :  { %3993 = vmatpush3.msra.mxu1 %v4851_v41  ;;  %4008 = vmatprep.mubr.msk.f32.mxu1 %vm4233_vm0, %v4232_v2 }
 0xd60   :  { %3994 = vmatprep.subr.mxu1 %v4232_v2 }
 0xd61   :  { %3995 = vmatpush3.msra.mxu1 %v4857_v42 }
 0xd62   :  { %3996 = vmatprep.subr.mxu1 %v4232_v2 }
 0xd63   :  { %3997 = vmatpush3.msra.mxu1 %v4864_v43 }
 0xd64   :  { %3998 = vmatprep.subr.mxu1 %v4232_v2 }
 0xd65   :  { %3999 = vmatpush3.msra.mxu1 %v4871_v44 }
 0xd66   :  { %4000 = vmatprep.subr.mxu1 %v4232_v2 }
 0xd67   :  { %4001 = vmatpush3.msra.mxu1 %v4878_v45 }
 0xd68   :  { %4002 = vmatprep.subr.mxu1 %v4232_v2 }
 0xd69   :  { %4003 = vmatpush3.msra.mxu1 %v4885_v46 }
 0xd6a   :  { %4004 = vmatprep.subr.mxu1 %v4232_v2 }
 0xd6b   :  { %4005 = vmatpush3.msra.mxu1 %v4892_v47 }
 0xd6c   :  { %4006 = vmatprep.subr.mxu1 %v4232_v2 }
 0xd6d   :  { %4007 = vmatpush3.msra.mxu1 %v4899_v48 }
 0xd6e   :  { %4030 = vmatprep.subr.mxu1 %v4232_v2 }
 0xe0e   :  { %v2017_v59 = vpop.f32.mrf.mxu1 }
 0xe0f   :  { %v2088_v11 = vadd.f32 %v5023_v49, %v2017_v59  ;;  %v3126_v49 = vld [vmem:[%s5363_s10 + $0x150] sm:$0xff] }
 0xe10   :  { %v3934_v60 = vpop.f32.mrf.mxu1 }
 0xe1e   :  { %v2158_v62 = vpop.f32.mrf.mxu1 }
 0xe1f   :  { %v2162_v63 = vadd.f32 %v2158_v62, %v2091_v61  ;;  %v2715_v61 = vld [vmem:[#allocation2 + $0x30] sm:$0xff] }
 0xe20   :  { %v3972_v0 = vpop.f32.mrf.mxu1 }
 0xe21   :  { %4220 = vtanh.f32 %v2162_v63 }
 0xe2e   :  { %v4221_v1 = vpop.eup %4220 }
 0xe2f   :  { %3990 = vmatmul.mubr.msk.f32.vlgmr.msra.gmra.mxu0 %vm72_vm1, %v4221_v1  ;;  %4009 = vmatmul.mubr.msk.f32.vlgmr.msra.gmra.mxu1 %vm72_vm1, %v4221_v1 }
 0xe30   :  { %4031 = vmatpush3.msra.mxu1 %v4851_v41  ;;  %4027 = vmatprep.mubr.msk.f32.mxu0 %vm4233_vm0, %v4232_v2 }
 0xe31   :  { %4032 = vmatprep.subr.mxu1 %v4232_v2  ;;  %4046 = vmatprep.mubr.msk.f32.mxu1 %vm4233_vm0, %v4232_v2 }
 0xe32   :  { %4033 = vmatpush3.msra.mxu1 %v4857_v42  ;;  %4012 = vmatpush3.msra.mxu0 %v3111_v3 }
 0xe33   :  { %4034 = vmatprep.subr.mxu1 %v4232_v2  ;;  %4013 = vmatprep.subr.mxu0 %v4232_v2 }
 0xe34   :  { %4035 = vmatpush3.msra.mxu1 %v4864_v43  ;;  %4014 = vmatpush3.msra.mxu0 %v3110_v4 }
 0xe35   :  { %4036 = vmatprep.subr.mxu1 %v4232_v2  ;;  %4015 = vmatprep.subr.mxu0 %v4232_v2 }
 0xe36   :  { %4037 = vmatpush3.msra.mxu1 %v4871_v44  ;;  %4016 = vmatpush3.msra.mxu0 %v3109_v5  ;;  %v3151_v5 = vld [vmem:[%s5363_s10 + $0x1f8] sm:$0xff] }
 0xe37   :  { %4038 = vmatprep.subr.mxu1 %v4232_v2  ;;  %4017 = vmatprep.subr.mxu0 %v4232_v2 }
 0xe38   :  { %4039 = vmatpush3.msra.mxu1 %v4878_v45  ;;  %4018 = vmatpush3.msra.mxu0 %v3108_v6  ;;  %v3150_v6 = vld [vmem:[%s5363_s10 + $0x1f0] sm:$0xff] }
 0xe39   :  { %4040 = vmatprep.subr.mxu1 %v4232_v2  ;;  %4019 = vmatprep.subr.mxu0 %v4232_v2 }
 0xe3a   :  { %4041 = vmatpush3.msra.mxu1 %v4885_v46  ;;  %4020 = vmatpush3.msra.mxu0 %v3107_v7  ;;  %v3149_v7 = vld [vmem:[%s5363_s10 + $0x1e8] sm:$0xff] }
 0xe3b   :  { %4042 = vmatprep.subr.mxu1 %v4232_v2  ;;  %4021 = vmatprep.subr.mxu0 %v4232_v2 }
 0xe3c   :  { %4043 = vmatpush3.msra.mxu1 %v4892_v47  ;;  %4022 = vmatpush3.msra.mxu0 %v3106_v8  ;;  %v3148_v8 = vld [vmem:[%s5363_s10 + $0x1e0] sm:$0xff] }
 0xe3d   :  { %4044 = vmatprep.subr.mxu1 %v4232_v2  ;;  %4023 = vmatprep.subr.mxu0 %v4232_v2 }
 0xe3e   :  { %4045 = vmatpush3.msra.mxu1 %v4899_v48  ;;  %4024 = vmatpush3.msra.mxu0 %v3105_v9  ;;  %v3147_v9 = vld [vmem:[%s5363_s10 + $0x1d8] sm:$0xff] }
 0xe3f   :  { %4068 = vmatprep.subr.mxu1 %v4232_v2  ;;  %4025 = vmatprep.subr.mxu0 %v4232_v2 }
 0xe40   :  { %4026 = vmatpush3.msra.mxu0 %v3104_v10  ;;  %v3146_v10 = vld [vmem:[%s5363_s10 + $0x1d0] sm:$0xff] }
 0xe41   :  { %4049 = vmatprep.subr.mxu0 %v4232_v2 }
 0xeef   :  { %v2242_v12 = vpop.f32.mrf.mxu0  ;;  %v2314_v14 = vpop.f32.mrf.mxu1 }
 0xef0   :  { %v2246_v15 = vadd.f32 %v2242_v12, %v2088_v11  ;;  %v2318_v16 = vadd.f32 %v2314_v14, %v2247_v13  ;;  %v3145_v11 = vld [vmem:[%s5363_s10 + $0x1c8] sm:$0xff]  ;;  %v3144_v12 = vld [vmem:[%s5363_s10 + $0x1c0] sm:$0xff]  ;;  %v2871_v14 = vld [vmem:[#allocation2 + $0x38] sm:$0xff] }
 0xef1   :  { %v3991_v17 = vpop.f32.mrf.mxu0  ;;  %v4010_v18 = vpop.f32.mrf.mxu1 }
 0xef2   :  { %4222 = vtanh.f32 %v2318_v16 }
 0xeff   :  { %v4223_v19 = vpop.eup %4222 }
 0xf00   :  { %4028 = vmatmul.mubr.msk.f32.vlgmr.msra.gmra.mxu0 %vm72_vm1, %v4223_v19  ;;  %4047 = vmatmul.mubr.msk.f32.vlgmr.msra.gmra.mxu1 %vm72_vm1, %v4223_v19 }
 0xf01   :  { %4069 = vmatpush3.msra.mxu1 %v4851_v41  ;;  %4065 = vmatprep.mubr.msk.f32.mxu0 %vm4233_vm0, %v4232_v2 }
 0xf02   :  { %4070 = vmatprep.subr.mxu1 %v4232_v2  ;;  %4084 = vmatprep.mubr.msk.f32.mxu1 %vm4233_vm0, %v4232_v2 }
 0xf03   :  { %4071 = vmatpush3.msra.mxu1 %v4857_v42  ;;  %4050 = vmatpush3.msra.mxu0 %v3121_v20 }
 0xf04   :  { %4072 = vmatprep.subr.mxu1 %v4232_v2  ;;  %4051 = vmatprep.subr.mxu0 %v4232_v2 }
 0xf05   :  { %4073 = vmatpush3.msra.mxu1 %v4864_v43  ;;  %4052 = vmatpush3.msra.mxu0 %v3120_v21 }
 0xf06   :  { %4074 = vmatprep.subr.mxu1 %v4232_v2  ;;  %4053 = vmatprep.subr.mxu0 %v4232_v2 }
 0xf07   :  { %4075 = vmatpush3.msra.mxu1 %v4871_v44  ;;  %4054 = vmatpush3.msra.mxu0 %v3119_v22  ;;  %v3153_v22 = vld [vmem:[%s5364_s11] ss:$0 sm:$0xff] }
 0xf08   :  { %4076 = vmatprep.subr.mxu1 %v4232_v2  ;;  %4055 = vmatprep.subr.mxu0 %v4232_v2 }
 0xf09   :  { %4077 = vmatpush3.msra.mxu1 %v4878_v45  ;;  %4056 = vmatpush3.msra.mxu0 %v3118_v23 }
 0xf0a   :  { %4078 = vmatprep.subr.mxu1 %v4232_v2  ;;  %4057 = vmatprep.subr.mxu0 %v4232_v2 }
 0xf0b   :  { %4079 = vmatpush3.msra.mxu1 %v4885_v46  ;;  %4058 = vmatpush3.msra.mxu0 %v3117_v24 }
 0xf0c   :  { %4080 = vmatprep.subr.mxu1 %v4232_v2  ;;  %4059 = vmatprep.subr.mxu0 %v4232_v2 }
 0xf0d   :  { %4081 = vmatpush3.msra.mxu1 %v4892_v47  ;;  %4060 = vmatpush3.msra.mxu0 %v3116_v25 }
 0xf0e   :  { %4082 = vmatprep.subr.mxu1 %v4232_v2  ;;  %4061 = vmatprep.subr.mxu0 %v4232_v2 }
 0xf0f   :  { %4083 = vmatpush3.msra.mxu1 %v4899_v48  ;;  %4062 = vmatpush3.msra.mxu0 %v3115_v26 }
 0xf10   :  { %4106 = vmatprep.subr.mxu1 %v4232_v2  ;;  %4063 = vmatprep.subr.mxu0 %v4232_v2 }
 0xf11   :  { %4064 = vmatpush3.msra.mxu0 %v3114_v27 }
 0xf12   :  { %4087 = vmatprep.subr.mxu0 %v4232_v2 }
 0xfc0   :  { %v2398_v28 = vpop.f32.mrf.mxu0  ;;  %v2470_v30 = vpop.f32.mrf.mxu1 }
 0xfc1   :  { %v2402_v31 = vadd.f32 %v2398_v28, %v2246_v15  ;;  %v2474_v32 = vadd.f32 %v2470_v30, %v2403_v29 }
 0xfc2   :  { %v4029_v33 = vpop.f32.mrf.mxu0  ;;  %v4048_v34 = vpop.f32.mrf.mxu1 }
 0xfc3   :  { %4224 = vtanh.f32 %v2474_v32 }
 0xfd0   :  { %v4225_v35 = vpop.eup %4224 }
 0xfd1   :  { %4066 = vmatmul.mubr.msk.f32.vlgmr.msra.gmra.mxu0 %vm72_vm1, %v4225_v35  ;;  %4085 = vmatmul.mubr.msk.f32.vlgmr.msra.gmra.mxu1 %vm72_vm1, %v4225_v35 }
 0xfd2   :  { %4107 = vmatpush3.msra.mxu1 %v4851_v41  ;;  %4103 = vmatprep.mubr.msk.f32.mxu0 %vm4233_vm0, %v4232_v2 }
 0xfd3   :  { %4108 = vmatprep.subr.mxu1 %v4232_v2  ;;  %4122 = vmatprep.mubr.msk.f32.mxu1 %vm4233_vm0, %v4232_v2 }
 0xfd4   :  { %4109 = vmatpush3.msra.mxu1 %v4857_v42  ;;  %4088 = vmatpush3.msra.mxu0 %v3131_v36 }
 0xfd5   :  { %4110 = vmatprep.subr.mxu1 %v4232_v2  ;;  %4089 = vmatprep.subr.mxu0 %v4232_v2 }
 0xfd6   :  { %4111 = vmatpush3.msra.mxu1 %v4864_v43  ;;  %4090 = vmatpush3.msra.mxu0 %v3130_v37 }
 0xfd7   :  { %4112 = vmatprep.subr.mxu1 %v4232_v2  ;;  %4091 = vmatprep.subr.mxu0 %v4232_v2 }
 0xfd8   :  { %4113 = vmatpush3.msra.mxu1 %v4871_v44  ;;  %4092 = vmatpush3.msra.mxu0 %v3129_v38 }
 0xfd9   :  { %4114 = vmatprep.subr.mxu1 %v4232_v2  ;;  %4093 = vmatprep.subr.mxu0 %v4232_v2 }
 0xfda   :  { %4115 = vmatpush3.msra.mxu1 %v4878_v45  ;;  %4094 = vmatpush3.msra.mxu0 %v3128_v39 }
 0xfdb   :  { %4116 = vmatprep.subr.mxu1 %v4232_v2  ;;  %4095 = vmatprep.subr.mxu0 %v4232_v2 }
 0xfdc   :  { %4117 = vmatpush3.msra.mxu1 %v4885_v46  ;;  %4096 = vmatpush3.msra.mxu0 %v3127_v40 }
 0xfdd   :  { %4118 = vmatprep.subr.mxu1 %v4232_v2  ;;  %4097 = vmatprep.subr.mxu0 %v4232_v2 }
 0xfde   :  { %4119 = vmatpush3.msra.mxu1 %v4892_v47  ;;  %4098 = vmatpush3.msra.mxu0 %v3126_v49 }
 0xfdf   :  { %4120 = vmatprep.subr.mxu1 %v4232_v2  ;;  %4099 = vmatprep.subr.mxu0 %v4232_v2 }
 0xfe0   :  { %4121 = vmatpush3.msra.mxu1 %v4899_v48  ;;  %4100 = vmatpush3.msra.mxu0 %v3125_v50 }
 0xfe1   :  { %4144 = vmatprep.subr.mxu1 %v4232_v2  ;;  %4101 = vmatprep.subr.mxu0 %v4232_v2 }
 0xfe2   :  { %4102 = vmatpush3.msra.mxu0 %v3124_v51 }
 0xfe3   :  { %4125 = vmatprep.subr.mxu0 %v4232_v2 }
0x1091   :  { %v2554_v52 = vpop.f32.mrf.mxu0  ;;  %v2626_v54 = vpop.f32.mrf.mxu1 }
0x1092   :  { %v2558_v55 = vadd.f32 %v2554_v52, %v2402_v31  ;;  %v2630_v56 = vadd.f32 %v2626_v54, %v2559_v53 }
0x1093   :  { %v4067_v57 = vpop.f32.mrf.mxu0  ;;  %v4086_v58 = vpop.f32.mrf.mxu1 }
0x1094   :  { %4226 = vtanh.f32 %v2630_v56 }
0x10a1   :  { %v4227_v59 = vpop.eup %4226 }
0x10a2   :  { %4104 = vmatmul.mubr.msk.f32.vlgmr.msra.gmra.mxu0 %vm72_vm1, %v4227_v59  ;;  %4123 = vmatmul.mubr.msk.f32.vlgmr.msra.gmra.mxu1 %vm72_vm1, %v4227_v59 }
0x10a3   :  { %4145 = vmatpush3.msra.mxu1 %v4851_v41  ;;  %4141 = vmatprep.mubr.msk.f32.mxu0 %vm4233_vm0, %v4232_v2  ;;  %v3141_v41 = vld [vmem:[%s5363_s10 + $0x1b8] sm:$0xff] }
0x10a4   :  { %4146 = vmatprep.subr.mxu1 %v4232_v2  ;;  %4160 = vmatprep.mubr.msk.f32.mxu1 %vm4233_vm0, %v4232_v2 }
0x10a5   :  { %4147 = vmatpush3.msra.mxu1 %v4857_v42  ;;  %4126 = vmatpush3.msra.mxu0 %v3141_v41  ;;  %v3140_v42 = vld [vmem:[%s5363_s10 + $0x1b0] sm:$0xff] }
0x10a6   :  { %4148 = vmatprep.subr.mxu1 %v4232_v2  ;;  %4127 = vmatprep.subr.mxu0 %v4232_v2 }
0x10a7   :  { %4149 = vmatpush3.msra.mxu1 %v4864_v43  ;;  %v3139_v43 = vld [vmem:[%s5363_s10 + $0x1a8] sm:$0xff]  ;;  %4128 = vmatpush3.msra.mxu0 %v3140_v42 }
0x10a8   :  { %4150 = vmatprep.subr.mxu1 %v4232_v2  ;;  %4129 = vmatprep.subr.mxu0 %v4232_v2 }
0x10a9   :  { %4151 = vmatpush3.msra.mxu1 %v4871_v44  ;;  %v3138_v44 = vld [vmem:[%s5363_s10 + $0x1a0] sm:$0xff]  ;;  %4130 = vmatpush3.msra.mxu0 %v3139_v43 }
0x10aa   :  { %4152 = vmatprep.subr.mxu1 %v4232_v2  ;;  %4131 = vmatprep.subr.mxu0 %v4232_v2 }
0x10ab   :  { %4153 = vmatpush3.msra.mxu1 %v4878_v45  ;;  %v3137_v45 = vld [vmem:[%s5363_s10 + $0x198] sm:$0xff]  ;;  %4132 = vmatpush3.msra.mxu0 %v3138_v44 }
0x10ac   :  { %4154 = vmatprep.subr.mxu1 %v4232_v2  ;;  %4133 = vmatprep.subr.mxu0 %v4232_v2 }
0x10ad   :  { %4155 = vmatpush3.msra.mxu1 %v4885_v46  ;;  %v3136_v46 = vld [vmem:[%s5363_s10 + $0x190] sm:$0xff]  ;;  %4134 = vmatpush3.msra.mxu0 %v3137_v45 }
0x10ae   :  { %4156 = vmatprep.subr.mxu1 %v4232_v2  ;;  %4135 = vmatprep.subr.mxu0 %v4232_v2 }
0x10af   :  { %4157 = vmatpush3.msra.mxu1 %v4892_v47  ;;  %v3135_v47 = vld [vmem:[%s5363_s10 + $0x188] sm:$0xff]  ;;  %4136 = vmatpush3.msra.mxu0 %v3136_v46 }
0x10b0   :  { %4158 = vmatprep.subr.mxu1 %v4232_v2  ;;  %4137 = vmatprep.subr.mxu0 %v4232_v2 }
0x10b1   :  { %4159 = vmatpush3.msra.mxu1 %v4899_v48  ;;  %v3134_v48 = vld [vmem:[%s5363_s10 + $0x180] sm:$0xff]  ;;  %4138 = vmatpush3.msra.mxu0 %v3135_v47 }
0x10b2   :  { %4139 = vmatprep.subr.mxu0 %v4232_v2 }
0x10b3   :  { %4140 = vmatpush3.msra.mxu0 %v3134_v48 }
0x10b4   :  { %4163 = vmatprep.subr.mxu0 %v4232_v2 }
0x1162   :  { %v2710_v60 = vpop.f32.mrf.mxu0  ;;  %v2782_v62 = vpop.f32.mrf.mxu1 }
0x1163   :  { %v2714_v63 = vadd.f32 %v2710_v60, %v2558_v55  ;;  %v2786_v0 = vadd.f32 %v2782_v62, %v2715_v61 }
0x1164   :  { %v4105_v1 = vpop.f32.mrf.mxu0  ;;  %v4124_v3 = vpop.f32.mrf.mxu1 }
0x1165   :  { %4228 = vtanh.f32 %v2786_v0 }
0x1172   :  { %v4229_v4 = vpop.eup %4228 }
0x1173   :  { %4142 = vmatmul.mubr.msk.f32.vlgmr.msra.gmra.mxu0 %vm72_vm1, %v4229_v4  ;;  %4161 = vmatmul.mubr.msk.f32.vlgmr.msra.gmra.mxu1 %vm72_vm1, %v4229_v4 }
0x1174   :  { %4179 = vmatprep.mubr.msk.f32.mxu0 %vm4233_vm0, %v4232_v2  ;;  %4164 = vmatpush3.msra.mxu0 %v3151_v5 }
0x1175   :  { %4165 = vmatprep.subr.mxu0 %v4232_v2 }
0x1176   :  { %4166 = vmatpush3.msra.mxu0 %v3150_v6 }
0x1177   :  { %4167 = vmatprep.subr.mxu0 %v4232_v2 }
0x1178   :  { %4168 = vmatpush3.msra.mxu0 %v3149_v7 }
0x1179   :  { %4169 = vmatprep.subr.mxu0 %v4232_v2 }
0x117a   :  { %4170 = vmatpush3.msra.mxu0 %v3148_v8 }
0x117b   :  { %4171 = vmatprep.subr.mxu0 %v4232_v2 }
0x117c   :  { %4172 = vmatpush3.msra.mxu0 %v3147_v9 }
0x117d   :  { %4173 = vmatprep.subr.mxu0 %v4232_v2 }
0x117e   :  { %4174 = vmatpush3.msra.mxu0 %v3146_v10 }
0x117f   :  { %4175 = vmatprep.subr.mxu0 %v4232_v2 }
0x1180   :  { %4176 = vmatpush3.msra.mxu0 %v3145_v11 }
0x1181   :  { %4177 = vmatprep.subr.mxu0 %v4232_v2 }
0x1182   :  { %4178 = vmatpush3.msra.mxu0 %v3144_v12 }
0x1233   :  { %v2866_v13 = vpop.f32.mrf.mxu0  ;;  %v2938_v15 = vpop.f32.mrf.mxu1 }
0x1234   :  { %v2870_v16 = vadd.f32 %v2866_v13, %v2714_v63  ;;  %v2942_v17 = vadd.f32 %v2938_v15, %v2871_v14 }
0x1235   :  { %v4143_v18 = vpop.f32.mrf.mxu0  ;;  %v4162_v19 = vpop.f32.mrf.mxu1 }
0x1236   :  { %4230 = vtanh.f32 %v2942_v17 }
0x1243   :  { %v4231_v20 = vpop.eup %4230 }
0x1244   :  { %4180 = vmatmul.mubr.msk.f32.vlgmr.msra.gmra.mxu0 %vm72_vm1, %v4231_v20 }
0x1304   :  { %v3022_v21 = vpop.f32.mrf.mxu0 }
0x1305   :  { %v3026_v23 = vadd.f32 %v3022_v21, %v2870_v16 }
0x1306   :  { %v4181_v2 = vpop.f32.mrf.mxu0 }
0x1307   :  { %v3034_v24 = vadd.f32 %v3153_v22, %v3026_v23 }
0x1309   :  { %3036 = vst.msk [vmem:[%s5365_s12] sm:$0xff] %vm3035_vm2, %v3034_v24 }

</bundles_post_ra>
